<compile_context>
chip_gen: v7x
topology: tpu7x:2x2x1
jax: 0.10.0
libtpu: 0.0.40
codegen_flags: <defaults>
</compile_context>

<pallas_src>
import functools
import math

import jax
import jax.numpy as jnp
from jax import lax
from jax.experimental import pallas as pl
from jax.experimental.pallas import tpu as pltpu  # noqa: F401  (kept for TPU-specific tweaks)


# ---------------------------------------------------------------------------
# Fully fused HGAT forward kernel
# ---------------------------------------------------------------------------
def _hgat_fused_kernel(x0_ref,
                       x1_ref, adj1_ref, wo1_ref, at1_ref, ao1_ref,
                       x2_ref, adj2_ref, wo2_ref, at2_ref, ao2_ref,
                       wx_ref, ws3_ref, st_ref, so_ref, sto_ref,
                       lw_ref, lb_ref,
                       out_ref, *, alpha, nhid, nheads, shid):
    H = nheads * nhid
    alpha_f = jnp.float32(alpha)
    neg_big = jnp.float32(-9e15)

    def leaky(v):
        return jnp.where(v > 0, v, alpha_f * v)

    x0 = x0_ref[...]
    # One lane-dense matmul for every projection sharing x0 as its LHS:
    #   cols [0:H)     -> W_t of meta-path 0 (all heads, head-major)
    #   cols [H:2H)    -> W_t of meta-path 1 (all heads, head-major)
    #   cols [2H:3H)   -> HGAT.W (schema-level input projection)
    xz = jnp.dot(x0, wx_ref[...], preferred_element_type=jnp.float32)        # (N_t, 3H)

    def node_attention(h_t_all, o_x, adj, wo_cat, at_cat, ao_rows):
        h_o_all = jnp.dot(o_x, wo_cat, preferred_element_type=jnp.float32)   # (N_o, H)
        # o-side logits for every head at once, produced already transposed
        # as (nheads, N_o): row h is  h_o(head h) . a_o(head h).
        e_o_t = lax.dot_general(ao_rows, h_o_all, (((1,), (1,)), ((), ())),
                                preferred_element_type=jnp.float32)          # (nheads, N_o)
        # t-side logits: VPU multiply, per-head lane reduce inside the loop.
        et_all = h_t_all * at_cat                                            # (N_t, H)

        heads = []
        for h in range(nheads):                                              # unrolled
            sl = slice(h * nhid, (h + 1) * nhid)
            e_t = jnp.sum(et_all[:, sl], axis=-1, keepdims=True)             # (N_t, 1)
            e = leaky(e_t + e_o_t[h:h + 1, :])                               # (N_t, N_o)
            # NOTE: rows of adj with zero edges become uniform attention
            # (same behavior as the PyTorch original).
            e = jnp.where(adj > 0, e, neg_big)
            m = jnp.max(e, axis=-1, keepdims=True)
            p = jnp.exp(e - m)
            attn = p / jnp.sum(p, axis=-1, keepdims=True)
            # TODO(synk): nd_dropout on the attention map skipped (inference mode).
            h_prime = jnp.dot(attn, h_o_all[:, sl],
                              preferred_element_type=jnp.float32)            # (N_t, nhid)
            heads.append(jnp.where(h_prime > 0, h_prime,
                                   jnp.exp(h_prime) - 1.0))                  # ELU
        return heads

    heads1 = node_attention(xz[:, 0:H], x1_ref[...], adj1_ref[...],
                            wo1_ref[...], at1_ref[...], ao1_ref[...])
    heads2 = node_attention(xz[:, H:2 * H], x2_ref[...], adj2_ref[...],
                            wo2_ref[...], at2_ref[...], ao2_ref[...])

    # ---- schema-level attention + linear + log_softmax ----------------------
    # TODO(synk): se_dropout skipped (inference mode).
    # Single matmul against block-diag(Ws, Ws, Ws):
    #   cols [0:shid)       = (x0 @ W) @ Ws
    #   cols [shid:2shid)   = o1 @ Ws
    #   cols [2shid:3shid)  = o2 @ Ws
    big = jnp.concatenate([xz[:, 2 * H:3 * H]] + heads1 + heads2, axis=-1)   # (N_t, 3H)
    h3 = jnp.dot(big, ws3_ref[...], preferred_element_type=jnp.float32)      # (N_t, 3*shid)
    h_t = h3[:, 0:shid]
    h_o1 = h3[:, shid:2 * shid]
    h_o2 = h3[:, 2 * shid:3 * shid]

    st = st_ref[...]      # (1, shid)  s_t
    so = so_ref[...]      # (1, shid)  s_o
    sto = sto_ref[...]    # (1, shid)  s_t + s_o  (algebraic fold of e0)

    # schema logits via VPU multiply + lane reduce (no N=1 MXU matmuls)
    base = jnp.sum(h_t * st, axis=-1, keepdims=True)                         # (N_t, 1)
    e0 = leaky(jnp.sum(h_t * sto, axis=-1, keepdims=True))
    e1 = leaky(base + jnp.sum(h_o1 * so, axis=-1, keepdims=True))
    e2 = leaky(base + jnp.sum(h_o2 * so, axis=-1, keepdims=True))

    # softmax over the 3 schemas
    m = jnp.maximum(jnp.maximum(e0, e1), e2)
    w0 = jnp.exp(e0 - m)
    w1 = jnp.exp(e1 - m)
    w2 = jnp.exp(e2 - m)
    h_emb = (w0 * h_t + w1 * h_o1 + w2 * h_o2) / (w0 + w1 + w2)              # (N_t, shid)

    logits = jnp.dot(h_emb, lw_ref[...], preferred_element_type=jnp.float32) + lb_ref[...]
    lm = jnp.max(logits, axis=-1, keepdims=True)
    z = logits - lm
    out_ref[...] = z - jnp.log(jnp.sum(jnp.exp(z), axis=-1, keepdims=True))  # log_softmax


# ---------------------------------------------------------------------------
# HGAT forward (param re-layout in plain JAX, all compute in one Pallas call)
# ---------------------------------------------------------------------------
def hgat_forward(params, x_list, adjs, alpha):
    # SchemaAttentionLayer in the reference assumes exactly 2 "other" schemas.
    assert len(x_list) == 3 and len(adjs) == 2
    x0 = x_list[0]
    N_t, tfeat = x0.shape
    nheads, _, nhid = params["node"][0]["W_t"].shape
    H = nheads * nhid
    shid = params["Ws"].shape[1]
    nclass = params["lin_W"].shape[1]

    def prep_node(p):
        # Concatenate heads along the output-feature (lane) axis -> one matmul.
        wt_cat = jnp.transpose(p["W_t"], (1, 0, 2)).reshape(p["W_t"].shape[1], H)
        wo_cat = jnp.transpose(p["W_o"], (1, 0, 2)).reshape(p["W_o"].shape[1], H)
        a_t = p["a"][:, :nhid, 0]                                  # (nheads, nhid)
        a_o = p["a"][:, nhid:, 0]                                  # (nheads, nhid)
        at_cat = a_t.reshape(1, H)                                 # lane-aligned with h_t_all
        # Block matrix so ONE NT matmul yields e_o for every head, transposed.
        ao_rows = (jnp.eye(nheads, dtype=p["a"].dtype)[:, :, None]
                   * a_o[:, None, :]).reshape(nheads, H)
        return wt_cat, wo_cat, at_cat, ao_rows

    wt1, wo1, at1, ao1 = prep_node(params["node"][0])
    wt2, wo2, at2, ao2 = prep_node(params["node"][1])

    # Single lane-dense RHS for every matmul whose LHS is x0.
    wx_cat = jnp.concatenate([wt1, wt2, params["W"]], axis=1)              # (tfeat, 3H)
    # Block-diagonal schema projection: one matmul projects h_t / o1 / o2.
    ws3 = jnp.kron(jnp.eye(3, dtype=params["Ws"].dtype), params["Ws"])     # (3H, 3*shid)

    s = params["s"]
    st = s[:shid, 0].reshape(1, shid)
    so = s[shid:, 0].reshape(1, shid)
    sto = st + so
    lb = params["lin_b"].reshape(1, nclass)

    operands = (x0,
                x_list[1], adjs[0], wo1, at1, ao1,
                x_list[2], adjs[1], wo2, at2, ao2,
                wx_cat, ws3, st, so, sto, params["lin_W"], lb)

    # Rough advisory cost estimate for XLA scheduling around the custom call.
    flops = (2 * N_t * tfeat * 3 * H + 2 * N_t * 3 * H * 3 * shid
             + 2 * N_t * shid * nclass)
    trans = 4 * N_t + N_t * nclass
    for i in range(2):
        N_o, f_o = x_list[i + 1].shape
        flops += (2 * N_o * f_o * H + 2 * nheads * N_o * H
                  + nheads * (2 * N_t * N_o * nhid + 6 * N_t * N_o))
        trans += nheads * (N_t * N_o + N_t * nhid)
    bytes_accessed = sum(int(op.size) * 4 for op in operands) + N_t * nclass * 4

    kernel = functools.partial(_hgat_fused_kernel, alpha=float(alpha),
                               nhid=int(nhid), nheads=int(nheads),
                               shid=int(shid))

    # TODO(synk): on v7x the two meta-paths could be split across the 2
    # TensorCores (core_map); kept as a single fused call since launch overhead
    # dominates at these sizes and v5e/v6e have one TC anyway.
    return pl.pallas_call(
        kernel,
        out_shape=jax.ShapeDtypeStruct((N_t, nclass), jnp.float32),
        cost_estimate=pl.CostEstimate(flops=int(flops),
                                      transcendentals=int(trans),
                                      bytes_accessed=int(bytes_accessed)),
    )(*operands)


# ---------------------------------------------------------------------------
# Pure-JAX reference (mirrors the PyTorch forward) for a correctness check
# ---------------------------------------------------------------------------
def _leaky(x, alpha):
    return jnp.where(x > 0, x, alpha * x)


def ref_node_attention(t, o, adj, Wt, Wo, a, alpha):
    h_t = t @ Wt
    h_o = o @ Wo
    nhid = Wt.shape[1]
    e = _leaky(h_t @ a[:nhid] + (h_o @ a[nhid:]).T, alpha)
    e = jnp.where(adj > 0, e, -9e15)
    attn = jax.nn.softmax(e, axis=1)
    return jax.nn.elu(attn @ h_o)


def ref_hgat(params, x_list, adjs, alpha):
    x0 = x_list[0]
    o_list = []
    for i in range(len(x_list) - 1):
        p = params["node"][i]
        heads = [ref_node_attention(x0, x_list[i + 1], adjs[i],
                                    p["W_t"][h], p["W_o"][h], p["a"][h], alpha)
                 for h in range(p["W_t"].shape[0])]
        o_list.append(jnp.concatenate(heads, axis=1))
    x = x0 @ params["W"]
    Ws, s = params["Ws"], params["s"]
    shid = Ws.shape[1]
    h_t = x @ Ws
    h_os = [o @ Ws for o in o_list]
    cols = [_leaky(h_t @ s[:shid] + h_t @ s[shid:], alpha)]
    cols += [_leaky(h_t @ s[:shid] + h_o @ s[shid:], alpha) for h_o in h_os]
    attn = jax.nn.softmax(jnp.concatenate(cols, axis=1), axis=1)
    h_emb = attn[:, 0:1] * h_t
    for k, h_o in enumerate(h_os):
        h_emb = h_emb + attn[:, k + 1:k + 2] * h_o
    logits = h_emb @ params["lin_W"] + params["lin_b"]
    return jax.nn.log_softmax(logits, axis=1)


# ---------------------------------------------------------------------------
# deterministic parameter init (xavier_uniform, gain=1.414)
# ---------------------------------------------------------------------------
def xavier_uniform(key, shape, gain=1.414):
    fan_in, fan_out = shape[-2], shape[-1]
    limit = gain * math.sqrt(6.0 / (fan_in + fan_out))
    return jax.random.uniform(key, shape, jnp.float32, -limit, limit)


if __name__ == "__main__":
    # Keep reference matmuls in full f32 so the pure-JAX reference matches the
    # in-kernel f32 MXU accumulation (TPU default matmul precision is bf16).
    jax.config.update("jax_default_matmul_precision", "highest")

    # model config (small, consistent with the module)
    tfeat = 16
    nfeat_list = [8, 24]
    nhid = 8
    shid = 16
    nclass = 4
    nheads = 2
    alpha = 0.2

    # graph sizes
    N_t = 8            # tweet / target nodes
    N_os = [16, 8]     # other node-type counts

    key = jax.random.PRNGKey(0)
    keys = list(jax.random.split(key, 32))
    kidx = iter(range(32))

    # inputs
    x_list = [jax.random.normal(keys[next(kidx)], (N_t, tfeat), jnp.float32)]
    for n_o, f_o in zip(N_os, nfeat_list):
        x_list.append(jax.random.normal(keys[next(kidx)], (n_o, f_o), jnp.float32))
    adjs = [
        (jax.random.uniform(keys[next(kidx)], (N_t, n_o)) > 0.5).astype(jnp.float32)
        for n_o in N_os
    ]

    # parameters
    params = {"node": []}
    for f_o in nfeat_list:
        params["node"].append({
            "W_t": xavier_uniform(keys[next(kidx)], (nheads, tfeat, nhid)),
            "W_o": xavier_uniform(keys[next(kidx)], (nheads, f_o, nhid)),
            "a":   xavier_uniform(keys[next(kidx)], (nheads, 2 * nhid, 1)),
        })
    params["W"] = xavier_uniform(keys[next(kidx)], (tfeat, nhid * nheads))
    params["Ws"] = xavier_uniform(keys[next(kidx)], (nhid * nheads, shid))
    params["s"] = xavier_uniform(keys[next(kidx)], (2 * shid, 1))
    lin_lim = 1.0 / math.sqrt(shid)
    params["lin_W"] = jax.random.uniform(keys[next(kidx)], (shid, nclass),
                                         jnp.float32, -lin_lim, lin_lim)
    params["lin_b"] = jax.random.uniform(keys[next(kidx)], (nclass,),
                                         jnp.float32, -lin_lim, lin_lim)

    out = jax.block_until_ready(hgat_forward(params, x_list, adjs, alpha))
    assert out.shape == (N_t, nclass), out.shape
    assert bool(jnp.all(jnp.isfinite(out)))

    ref = jax.block_until_ready(ref_hgat(params, x_list, adjs, alpha))
    assert jnp.allclose(out, ref, atol=1e-3, rtol=1e-3), (out, ref)

    print("KERNEL_OK")
</pallas_src>

<mosaic_0001>
module attributes {stable_mosaic.version = 11 : i64} {
  func.func @_hgat_fused_kernel(%arg0: memref<8x16xf32, #tpu.memory_space<vmem>>, %arg1: memref<16x8xf32, #tpu.memory_space<vmem>>, %arg2: memref<8x16xf32, #tpu.memory_space<vmem>>, %arg3: memref<8x16xf32, #tpu.memory_space<vmem>>, %arg4: memref<1x16xf32, #tpu.memory_space<vmem>>, %arg5: memref<2x16xf32, #tpu.memory_space<vmem>>, %arg6: memref<8x24xf32, #tpu.memory_space<vmem>>, %arg7: memref<8x8xf32, #tpu.memory_space<vmem>>, %arg8: memref<24x16xf32, #tpu.memory_space<vmem>>, %arg9: memref<1x16xf32, #tpu.memory_space<vmem>>, %arg10: memref<2x16xf32, #tpu.memory_space<vmem>>, %arg11: memref<16x48xf32, #tpu.memory_space<vmem>>, %arg12: memref<48x48xf32, #tpu.memory_space<vmem>>, %arg13: memref<1x16xf32, #tpu.memory_space<vmem>>, %arg14: memref<1x16xf32, #tpu.memory_space<vmem>>, %arg15: memref<1x16xf32, #tpu.memory_space<vmem>>, %arg16: memref<16x4xf32, #tpu.memory_space<vmem>>, %arg17: memref<1x4xf32, #tpu.memory_space<vmem>>, %arg18: memref<8x4xf32, #tpu.memory_space<vmem>>) attributes {dimension_semantics = [], scalar_prefetch = 0 : i64, scratch_operands = 0 : i64, tpu.core_type = #tpu.core_type<tc>} {
    %c0 = arith.constant 0 : index
    %c0_0 = arith.constant 0 : index
    %0 = vector.load %arg0[%c0, %c0_0] : memref<8x16xf32, #tpu.memory_space<vmem>>, vector<8x16xf32>
    %c0_1 = arith.constant 0 : index
    %c0_2 = arith.constant 0 : index
    %1 = vector.load %arg11[%c0_1, %c0_2] : memref<16x48xf32, #tpu.memory_space<vmem>>, vector<16x48xf32>
    %cst = arith.constant dense<0.000000e+00> : vector<8x48xf32>
    %2 = tpu.matmul %0, %1, %cst {dimension_numbers = #tpu.dot_dimension_numbers<[1], [0], [0], [1], [0, 0, 1, 1], [], []>, precision = #tpu.contract_precision<fp32>} : vector<8x16xf32>, vector<16x48xf32>, vector<8x48xf32> -> vector<8x48xf32>
    %3 = vector.extract_strided_slice %2 {offsets = [0, 0], sizes = [8, 16], strides = [1, 1]} : vector<8x48xf32> to vector<8x16xf32>
    %c0_3 = arith.constant 0 : index
    %c0_4 = arith.constant 0 : index
    %4 = vector.load %arg1[%c0_3, %c0_4] : memref<16x8xf32, #tpu.memory_space<vmem>>, vector<16x8xf32>
    %c0_5 = arith.constant 0 : index
    %c0_6 = arith.constant 0 : index
    %5 = vector.load %arg2[%c0_5, %c0_6] : memref<8x16xf32, #tpu.memory_space<vmem>>, vector<8x16xf32>
    %c0_7 = arith.constant 0 : index
    %c0_8 = arith.constant 0 : index
    %6 = vector.load %arg3[%c0_7, %c0_8] : memref<8x16xf32, #tpu.memory_space<vmem>>, vector<8x16xf32>
    %c0_9 = arith.constant 0 : index
    %c0_10 = arith.constant 0 : index
    %7 = vector.load %arg4[%c0_9, %c0_10] : memref<1x16xf32, #tpu.memory_space<vmem>>, vector<1x16xf32>
    %c0_11 = arith.constant 0 : index
    %c0_12 = arith.constant 0 : index
    %8 = vector.load %arg5[%c0_11, %c0_12] : memref<2x16xf32, #tpu.memory_space<vmem>>, vector<2x16xf32>
    %cst_13 = arith.constant dense<0.000000e+00> : vector<16x16xf32>
    %9 = tpu.matmul %4, %6, %cst_13 {dimension_numbers = #tpu.dot_dimension_numbers<[1], [0], [0], [1], [0, 0, 1, 1], [], []>, precision = #tpu.contract_precision<fp32>} : vector<16x8xf32>, vector<8x16xf32>, vector<16x16xf32> -> vector<16x16xf32>
    %cst_14 = arith.constant dense<0.000000e+00> : vector<2x16xf32>
    %10 = tpu.matmul %8, %9, %cst_14 {dimension_numbers = #tpu.dot_dimension_numbers<[1], [1], [0], [0], [0, 0, 1, 0], [], []>, precision = #tpu.contract_precision<fp32>} : vector<2x16xf32>, vector<16x16xf32>, vector<2x16xf32> -> vector<2x16xf32>
    %11 = vector.broadcast %7 : vector<1x16xf32> to vector<8x16xf32>
    %12 = arith.mulf %3, %11 : vector<8x16xf32>
    %13 = vector.extract_strided_slice %12 {offsets = [0, 0], sizes = [8, 8], strides = [1, 1]} : vector<8x16xf32> to vector<8x8xf32>
    %cst_15 = arith.constant dense<0.000000e+00> : vector<8xf32>
    %14 = vector.multi_reduction <add>, %13, %cst_15 [1] : vector<8x8xf32> to vector<8xf32>
    %15 = vector.shape_cast %14 : vector<8xf32> to vector<8x1xf32>
    %16 = vector.extract_strided_slice %10 {offsets = [0, 0], sizes = [1, 16], strides = [1, 1]} : vector<2x16xf32> to vector<1x16xf32>
    %17 = vector.broadcast %15 : vector<8x1xf32> to vector<8x16xf32>
    %18 = vector.broadcast %16 : vector<1x16xf32> to vector<8x16xf32>
    %19 = arith.addf %17, %18 : vector<8x16xf32>
    %cst_16 = arith.constant 0.000000e+00 : f32
    %20 = vector.broadcast %cst_16 : f32 to vector<8x16xf32>
    %21 = arith.cmpf ogt, %19, %20 : vector<8x16xf32>
    %cst_17 = arith.constant 2.000000e-01 : f32
    %22 = vector.broadcast %cst_17 : f32 to vector<8x16xf32>
    %23 = arith.mulf %22, %19 : vector<8x16xf32>
    %24 = arith.select %21, %19, %23 : vector<8x16xi1>, vector<8x16xf32>
    %cst_18 = arith.constant 0.000000e+00 : f32
    %25 = vector.broadcast %cst_18 : f32 to vector<8x16xf32>
    %26 = arith.cmpf ogt, %5, %25 : vector<8x16xf32>
    %cst_19 = arith.constant -9.000000e+15 : f32
    %27 = vector.broadcast %cst_19 : f32 to vector<8x16xf32>
    %28 = arith.select %26, %24, %27 : vector<8x16xi1>, vector<8x16xf32>
    %cst_20 = arith.constant dense<0xFF800000> : vector<8xf32>
    %29 = vector.multi_reduction <maximumf>, %28, %cst_20 [1] : vector<8x16xf32> to vector<8xf32>
    %30 = vector.shape_cast %29 : vector<8xf32> to vector<8x1xf32>
    %31 = vector.broadcast %30 : vector<8x1xf32> to vector<8x16xf32>
    %32 = arith.subf %28, %31 : vector<8x16xf32>
    %33 = math.exp %32 : vector<8x16xf32>
    %cst_21 = arith.constant dense<0.000000e+00> : vector<8xf32>
    %34 = vector.multi_reduction <add>, %33, %cst_21 [1] : vector<8x16xf32> to vector<8xf32>
    %35 = vector.shape_cast %34 : vector<8xf32> to vector<8x1xf32>
    %36 = vector.broadcast %35 : vector<8x1xf32> to vector<8x16xf32>
    %37 = arith.divf %33, %36 : vector<8x16xf32>
    %38 = vector.extract_strided_slice %9 {offsets = [0, 0], sizes = [16, 8], strides = [1, 1]} : vector<16x16xf32> to vector<16x8xf32>
    %cst_22 = arith.constant dense<0.000000e+00> : vector<8x8xf32>
    %39 = tpu.matmul %37, %38, %cst_22 {dimension_numbers = #tpu.dot_dimension_numbers<[1], [0], [0], [1], [0, 0, 1, 1], [], []>, precision = #tpu.contract_precision<fp32>} : vector<8x16xf32>, vector<16x8xf32>, vector<8x8xf32> -> vector<8x8xf32>
    %cst_23 = arith.constant 0.000000e+00 : f32
    %40 = vector.broadcast %cst_23 : f32 to vector<8x8xf32>
    %41 = arith.cmpf ogt, %39, %40 : vector<8x8xf32>
    %42 = math.exp %39 : vector<8x8xf32>
    %cst_24 = arith.constant 1.000000e+00 : f32
    %43 = vector.broadcast %cst_24 : f32 to vector<8x8xf32>
    %44 = arith.subf %42, %43 : vector<8x8xf32>
    %45 = arith.select %41, %39, %44 : vector<8x8xi1>, vector<8x8xf32>
    %46 = vector.extract_strided_slice %12 {offsets = [0, 8], sizes = [8, 8], strides = [1, 1]} : vector<8x16xf32> to vector<8x8xf32>
    %cst_25 = arith.constant dense<0.000000e+00> : vector<8xf32>
    %47 = vector.multi_reduction <add>, %46, %cst_25 [1] : vector<8x8xf32> to vector<8xf32>
    %48 = vector.shape_cast %47 : vector<8xf32> to vector<8x1xf32>
    %49 = vector.extract_strided_slice %10 {offsets = [1, 0], sizes = [1, 16], strides = [1, 1]} : vector<2x16xf32> to vector<1x16xf32>
    %50 = vector.broadcast %48 : vector<8x1xf32> to vector<8x16xf32>
    %51 = vector.broadcast %49 : vector<1x16xf32> to vector<8x16xf32>
    %52 = arith.addf %50, %51 : vector<8x16xf32>
    %cst_26 = arith.constant 0.000000e+00 : f32
    %53 = vector.broadcast %cst_26 : f32 to vector<8x16xf32>
    %54 = arith.cmpf ogt, %52, %53 : vector<8x16xf32>
    %cst_27 = arith.constant 2.000000e-01 : f32
    %55 = vector.broadcast %cst_27 : f32 to vector<8x16xf32>
    %56 = arith.mulf %55, %52 : vector<8x16xf32>
    %57 = arith.select %54, %52, %56 : vector<8x16xi1>, vector<8x16xf32>
    %cst_28 = arith.constant 0.000000e+00 : f32
    %58 = vector.broadcast %cst_28 : f32 to vector<8x16xf32>
    %59 = arith.cmpf ogt, %5, %58 : vector<8x16xf32>
    %cst_29 = arith.constant -9.000000e+15 : f32
    %60 = vector.broadcast %cst_29 : f32 to vector<8x16xf32>
    %61 = arith.select %59, %57, %60 : vector<8x16xi1>, vector<8x16xf32>
    %cst_30 = arith.constant dense<0xFF800000> : vector<8xf32>
    %62 = vector.multi_reduction <maximumf>, %61, %cst_30 [1] : vector<8x16xf32> to vector<8xf32>
    %63 = vector.shape_cast %62 : vector<8xf32> to vector<8x1xf32>
    %64 = vector.broadcast %63 : vector<8x1xf32> to vector<8x16xf32>
    %65 = arith.subf %61, %64 : vector<8x16xf32>
    %66 = math.exp %65 : vector<8x16xf32>
    %cst_31 = arith.constant dense<0.000000e+00> : vector<8xf32>
    %67 = vector.multi_reduction <add>, %66, %cst_31 [1] : vector<8x16xf32> to vector<8xf32>
    %68 = vector.shape_cast %67 : vector<8xf32> to vector<8x1xf32>
    %69 = vector.broadcast %68 : vector<8x1xf32> to vector<8x16xf32>
    %70 = arith.divf %66, %69 : vector<8x16xf32>
    %71 = vector.extract_strided_slice %9 {offsets = [0, 8], sizes = [16, 8], strides = [1, 1]} : vector<16x16xf32> to vector<16x8xf32>
    %cst_32 = arith.constant dense<0.000000e+00> : vector<8x8xf32>
    %72 = tpu.matmul %70, %71, %cst_32 {dimension_numbers = #tpu.dot_dimension_numbers<[1], [0], [0], [1], [0, 0, 1, 1], [], []>, precision = #tpu.contract_precision<fp32>} : vector<8x16xf32>, vector<16x8xf32>, vector<8x8xf32> -> vector<8x8xf32>
    %cst_33 = arith.constant 0.000000e+00 : f32
    %73 = vector.broadcast %cst_33 : f32 to vector<8x8xf32>
    %74 = arith.cmpf ogt, %72, %73 : vector<8x8xf32>
    %75 = math.exp %72 : vector<8x8xf32>
    %cst_34 = arith.constant 1.000000e+00 : f32
    %76 = vector.broadcast %cst_34 : f32 to vector<8x8xf32>
    %77 = arith.subf %75, %76 : vector<8x8xf32>
    %78 = arith.select %74, %72, %77 : vector<8x8xi1>, vector<8x8xf32>
    %79 = vector.extract_strided_slice %2 {offsets = [0, 16], sizes = [8, 16], strides = [1, 1]} : vector<8x48xf32> to vector<8x16xf32>
    %c0_35 = arith.constant 0 : index
    %c0_36 = arith.constant 0 : index
    %80 = vector.load %arg6[%c0_35, %c0_36] : memref<8x24xf32, #tpu.memory_space<vmem>>, vector<8x24xf32>
    %c0_37 = arith.constant 0 : index
    %c0_38 = arith.constant 0 : index
    %81 = vector.load %arg7[%c0_37, %c0_38] : memref<8x8xf32, #tpu.memory_space<vmem>>, vector<8x8xf32>
    %c0_39 = arith.constant 0 : index
    %c0_40 = arith.constant 0 : index
    %82 = vector.load %arg8[%c0_39, %c0_40] : memref<24x16xf32, #tpu.memory_space<vmem>>, vector<24x16xf32>
    %c0_41 = arith.constant 0 : index
    %c0_42 = arith.constant 0 : index
    %83 = vector.load %arg9[%c0_41, %c0_42] : memref<1x16xf32, #tpu.memory_space<vmem>>, vector<1x16xf32>
    %c0_43 = arith.constant 0 : index
    %c0_44 = arith.constant 0 : index
    %84 = vector.load %arg10[%c0_43, %c0_44] : memref<2x16xf32, #tpu.memory_space<vmem>>, vector<2x16xf32>
    %cst_45 = arith.constant dense<0.000000e+00> : vector<8x16xf32>
    %85 = tpu.matmul %80, %82, %cst_45 {dimension_numbers = #tpu.dot_dimension_numbers<[1], [0], [0], [1], [0, 0, 1, 1], [], []>, precision = #tpu.contract_precision<fp32>} : vector<8x24xf32>, vector<24x16xf32>, vector<8x16xf32> -> vector<8x16xf32>
    %cst_46 = arith.constant dense<0.000000e+00> : vector<2x8xf32>
    %86 = tpu.matmul %84, %85, %cst_46 {dimension_numbers = #tpu.dot_dimension_numbers<[1], [1], [0], [0], [0, 0, 1, 0], [], []>, precision = #tpu.contract_precision<fp32>} : vector<2x16xf32>, vector<8x16xf32>, vector<2x8xf32> -> vector<2x8xf32>
    %87 = vector.broadcast %83 : vector<1x16xf32> to vector<8x16xf32>
    %88 = arith.mulf %79, %87 : vector<8x16xf32>
    %89 = vector.extract_strided_slice %88 {offsets = [0, 0], sizes = [8, 8], strides = [1, 1]} : vector<8x16xf32> to vector<8x8xf32>
    %cst_47 = arith.constant dense<0.000000e+00> : vector<8xf32>
    %90 = vector.multi_reduction <add>, %89, %cst_47 [1] : vector<8x8xf32> to vector<8xf32>
    %91 = vector.shape_cast %90 : vector<8xf32> to vector<8x1xf32>
    %92 = vector.extract_strided_slice %86 {offsets = [0, 0], sizes = [1, 8], strides = [1, 1]} : vector<2x8xf32> to vector<1x8xf32>
    %93 = vector.broadcast %91 : vector<8x1xf32> to vector<8x8xf32>
    %94 = vector.broadcast %92 : vector<1x8xf32> to vector<8x8xf32>
    %95 = arith.addf %93, %94 : vector<8x8xf32>
    %cst_48 = arith.constant 0.000000e+00 : f32
    %96 = vector.broadcast %cst_48 : f32 to vector<8x8xf32>
    %97 = arith.cmpf ogt, %95, %96 : vector<8x8xf32>
    %cst_49 = arith.constant 2.000000e-01 : f32
    %98 = vector.broadcast %cst_49 : f32 to vector<8x8xf32>
    %99 = arith.mulf %98, %95 : vector<8x8xf32>
    %100 = arith.select %97, %95, %99 : vector<8x8xi1>, vector<8x8xf32>
    %cst_50 = arith.constant 0.000000e+00 : f32
    %101 = vector.broadcast %cst_50 : f32 to vector<8x8xf32>
    %102 = arith.cmpf ogt, %81, %101 : vector<8x8xf32>
    %cst_51 = arith.constant -9.000000e+15 : f32
    %103 = vector.broadcast %cst_51 : f32 to vector<8x8xf32>
    %104 = arith.select %102, %100, %103 : vector<8x8xi1>, vector<8x8xf32>
    %cst_52 = arith.constant dense<0xFF800000> : vector<8xf32>
    %105 = vector.multi_reduction <maximumf>, %104, %cst_52 [1] : vector<8x8xf32> to vector<8xf32>
    %106 = vector.shape_cast %105 : vector<8xf32> to vector<8x1xf32>
    %107 = vector.broadcast %106 : vector<8x1xf32> to vector<8x8xf32>
    %108 = arith.subf %104, %107 : vector<8x8xf32>
    %109 = math.exp %108 : vector<8x8xf32>
    %cst_53 = arith.constant dense<0.000000e+00> : vector<8xf32>
    %110 = vector.multi_reduction <add>, %109, %cst_53 [1] : vector<8x8xf32> to vector<8xf32>
    %111 = vector.shape_cast %110 : vector<8xf32> to vector<8x1xf32>
    %112 = vector.broadcast %111 : vector<8x1xf32> to vector<8x8xf32>
    %113 = arith.divf %109, %112 : vector<8x8xf32>
    %114 = vector.extract_strided_slice %85 {offsets = [0, 0], sizes = [8, 8], strides = [1, 1]} : vector<8x16xf32> to vector<8x8xf32>
    %cst_54 = arith.constant dense<0.000000e+00> : vector<8x8xf32>
    %115 = tpu.matmul %113, %114, %cst_54 {dimension_numbers = #tpu.dot_dimension_numbers<[1], [0], [0], [1], [0, 0, 1, 1], [], []>, precision = #tpu.contract_precision<fp32>} : vector<8x8xf32>, vector<8x8xf32>, vector<8x8xf32> -> vector<8x8xf32>
    %cst_55 = arith.constant 0.000000e+00 : f32
    %116 = vector.broadcast %cst_55 : f32 to vector<8x8xf32>
    %117 = arith.cmpf ogt, %115, %116 : vector<8x8xf32>
    %118 = math.exp %115 : vector<8x8xf32>
    %cst_56 = arith.constant 1.000000e+00 : f32
    %119 = vector.broadcast %cst_56 : f32 to vector<8x8xf32>
    %120 = arith.subf %118, %119 : vector<8x8xf32>
    %121 = arith.select %117, %115, %120 : vector<8x8xi1>, vector<8x8xf32>
    %122 = vector.extract_strided_slice %88 {offsets = [0, 8], sizes = [8, 8], strides = [1, 1]} : vector<8x16xf32> to vector<8x8xf32>
    %cst_57 = arith.constant dense<0.000000e+00> : vector<8xf32>
    %123 = vector.multi_reduction <add>, %122, %cst_57 [1] : vector<8x8xf32> to vector<8xf32>
    %124 = vector.shape_cast %123 : vector<8xf32> to vector<8x1xf32>
    %125 = vector.extract_strided_slice %86 {offsets = [1, 0], sizes = [1, 8], strides = [1, 1]} : vector<2x8xf32> to vector<1x8xf32>
    %126 = vector.broadcast %124 : vector<8x1xf32> to vector<8x8xf32>
    %127 = vector.broadcast %125 : vector<1x8xf32> to vector<8x8xf32>
    %128 = arith.addf %126, %127 : vector<8x8xf32>
    %cst_58 = arith.constant 0.000000e+00 : f32
    %129 = vector.broadcast %cst_58 : f32 to vector<8x8xf32>
    %130 = arith.cmpf ogt, %128, %129 : vector<8x8xf32>
    %cst_59 = arith.constant 2.000000e-01 : f32
    %131 = vector.broadcast %cst_59 : f32 to vector<8x8xf32>
    %132 = arith.mulf %131, %128 : vector<8x8xf32>
    %133 = arith.select %130, %128, %132 : vector<8x8xi1>, vector<8x8xf32>
    %cst_60 = arith.constant 0.000000e+00 : f32
    %134 = vector.broadcast %cst_60 : f32 to vector<8x8xf32>
    %135 = arith.cmpf ogt, %81, %134 : vector<8x8xf32>
    %cst_61 = arith.constant -9.000000e+15 : f32
    %136 = vector.broadcast %cst_61 : f32 to vector<8x8xf32>
    %137 = arith.select %135, %133, %136 : vector<8x8xi1>, vector<8x8xf32>
    %cst_62 = arith.constant dense<0xFF800000> : vector<8xf32>
    %138 = vector.multi_reduction <maximumf>, %137, %cst_62 [1] : vector<8x8xf32> to vector<8xf32>
    %139 = vector.shape_cast %138 : vector<8xf32> to vector<8x1xf32>
    %140 = vector.broadcast %139 : vector<8x1xf32> to vector<8x8xf32>
    %141 = arith.subf %137, %140 : vector<8x8xf32>
    %142 = math.exp %141 : vector<8x8xf32>
    %cst_63 = arith.constant dense<0.000000e+00> : vector<8xf32>
    %143 = vector.multi_reduction <add>, %142, %cst_63 [1] : vector<8x8xf32> to vector<8xf32>
    %144 = vector.shape_cast %143 : vector<8xf32> to vector<8x1xf32>
    %145 = vector.broadcast %144 : vector<8x1xf32> to vector<8x8xf32>
    %146 = arith.divf %142, %145 : vector<8x8xf32>
    %147 = vector.extract_strided_slice %85 {offsets = [0, 8], sizes = [8, 8], strides = [1, 1]} : vector<8x16xf32> to vector<8x8xf32>
    %cst_64 = arith.constant dense<0.000000e+00> : vector<8x8xf32>
    %148 = tpu.matmul %146, %147, %cst_64 {dimension_numbers = #tpu.dot_dimension_numbers<[1], [0], [0], [1], [0, 0, 1, 1], [], []>, precision = #tpu.contract_precision<fp32>} : vector<8x8xf32>, vector<8x8xf32>, vector<8x8xf32> -> vector<8x8xf32>
    %cst_65 = arith.constant 0.000000e+00 : f32
    %149 = vector.broadcast %cst_65 : f32 to vector<8x8xf32>
    %150 = arith.cmpf ogt, %148, %149 : vector<8x8xf32>
    %151 = math.exp %148 : vector<8x8xf32>
    %cst_66 = arith.constant 1.000000e+00 : f32
    %152 = vector.broadcast %cst_66 : f32 to vector<8x8xf32>
    %153 = arith.subf %151, %152 : vector<8x8xf32>
    %154 = arith.select %150, %148, %153 : vector<8x8xi1>, vector<8x8xf32>
    %155 = vector.extract_strided_slice %2 {offsets = [0, 32], sizes = [8, 16], strides = [1, 1]} : vector<8x48xf32> to vector<8x16xf32>
    %156 = tpu.concatenate %155, %45, %78, %121, %154 in 1 : vector<8x16xf32>, vector<8x8xf32>, vector<8x8xf32>, vector<8x8xf32>, vector<8x8xf32> -> vector<8x48xf32>
    %c0_67 = arith.constant 0 : index
    %c0_68 = arith.constant 0 : index
    %157 = vector.load %arg12[%c0_67, %c0_68] : memref<48x48xf32, #tpu.memory_space<vmem>>, vector<48x48xf32>
    %cst_69 = arith.constant dense<0.000000e+00> : vector<8x48xf32>
    %158 = tpu.matmul %156, %157, %cst_69 {dimension_numbers = #tpu.dot_dimension_numbers<[1], [0], [0], [1], [0, 0, 1, 1], [], []>, precision = #tpu.contract_precision<fp32>} : vector<8x48xf32>, vector<48x48xf32>, vector<8x48xf32> -> vector<8x48xf32>
    %159 = vector.extract_strided_slice %158 {offsets = [0, 0], sizes = [8, 16], strides = [1, 1]} : vector<8x48xf32> to vector<8x16xf32>
    %160 = vector.extract_strided_slice %158 {offsets = [0, 16], sizes = [8, 16], strides = [1, 1]} : vector<8x48xf32> to vector<8x16xf32>
    %161 = vector.extract_strided_slice %158 {offsets = [0, 32], sizes = [8, 16], strides = [1, 1]} : vector<8x48xf32> to vector<8x16xf32>
    %c0_70 = arith.constant 0 : index
    %c0_71 = arith.constant 0 : index
    %162 = vector.load %arg13[%c0_70, %c0_71] : memref<1x16xf32, #tpu.memory_space<vmem>>, vector<1x16xf32>
    %c0_72 = arith.constant 0 : index
    %c0_73 = arith.constant 0 : index
    %163 = vector.load %arg14[%c0_72, %c0_73] : memref<1x16xf32, #tpu.memory_space<vmem>>, vector<1x16xf32>
    %c0_74 = arith.constant 0 : index
    %c0_75 = arith.constant 0 : index
    %164 = vector.load %arg15[%c0_74, %c0_75] : memref<1x16xf32, #tpu.memory_space<vmem>>, vector<1x16xf32>
    %165 = vector.broadcast %162 : vector<1x16xf32> to vector<8x16xf32>
    %166 = arith.mulf %159, %165 : vector<8x16xf32>
    %cst_76 = arith.constant dense<0.000000e+00> : vector<8xf32>
    %167 = vector.multi_reduction <add>, %166, %cst_76 [1] : vector<8x16xf32> to vector<8xf32>
    %168 = vector.shape_cast %167 : vector<8xf32> to vector<8x1xf32>
    %169 = vector.broadcast %164 : vector<1x16xf32> to vector<8x16xf32>
    %170 = arith.mulf %159, %169 : vector<8x16xf32>
    %cst_77 = arith.constant dense<0.000000e+00> : vector<8xf32>
    %171 = vector.multi_reduction <add>, %170, %cst_77 [1] : vector<8x16xf32> to vector<8xf32>
    %172 = vector.shape_cast %171 : vector<8xf32> to vector<8x1xf32>
    %cst_78 = arith.constant 0.000000e+00 : f32
    %173 = vector.broadcast %cst_78 : f32 to vector<8x1xf32>
    %174 = arith.cmpf ogt, %172, %173 : vector<8x1xf32>
    %cst_79 = arith.constant 2.000000e-01 : f32
    %175 = vector.broadcast %cst_79 : f32 to vector<8x1xf32>
    %176 = arith.mulf %175, %172 : vector<8x1xf32>
    %177 = arith.select %174, %172, %176 : vector<8x1xi1>, vector<8x1xf32>
    %178 = vector.broadcast %163 : vector<1x16xf32> to vector<8x16xf32>
    %179 = arith.mulf %160, %178 : vector<8x16xf32>
    %cst_80 = arith.constant dense<0.000000e+00> : vector<8xf32>
    %180 = vector.multi_reduction <add>, %179, %cst_80 [1] : vector<8x16xf32> to vector<8xf32>
    %181 = vector.shape_cast %180 : vector<8xf32> to vector<8x1xf32>
    %182 = arith.addf %168, %181 : vector<8x1xf32>
    %cst_81 = arith.constant 0.000000e+00 : f32
    %183 = vector.broadcast %cst_81 : f32 to vector<8x1xf32>
    %184 = arith.cmpf ogt, %182, %183 : vector<8x1xf32>
    %cst_82 = arith.constant 2.000000e-01 : f32
    %185 = vector.broadcast %cst_82 : f32 to vector<8x1xf32>
    %186 = arith.mulf %185, %182 : vector<8x1xf32>
    %187 = arith.select %184, %182, %186 : vector<8x1xi1>, vector<8x1xf32>
    %188 = vector.broadcast %163 : vector<1x16xf32> to vector<8x16xf32>
    %189 = arith.mulf %161, %188 : vector<8x16xf32>
    %cst_83 = arith.constant dense<0.000000e+00> : vector<8xf32>
    %190 = vector.multi_reduction <add>, %189, %cst_83 [1] : vector<8x16xf32> to vector<8xf32>
    %191 = vector.shape_cast %190 : vector<8xf32> to vector<8x1xf32>
    %192 = arith.addf %168, %191 : vector<8x1xf32>
    %cst_84 = arith.constant 0.000000e+00 : f32
    %193 = vector.broadcast %cst_84 : f32 to vector<8x1xf32>
    %194 = arith.cmpf ogt, %192, %193 : vector<8x1xf32>
    %cst_85 = arith.constant 2.000000e-01 : f32
    %195 = vector.broadcast %cst_85 : f32 to vector<8x1xf32>
    %196 = arith.mulf %195, %192 : vector<8x1xf32>
    %197 = arith.select %194, %192, %196 : vector<8x1xi1>, vector<8x1xf32>
    %198 = arith.maximumf %177, %187 : vector<8x1xf32>
    %199 = arith.maximumf %198, %197 : vector<8x1xf32>
    %200 = arith.subf %177, %199 : vector<8x1xf32>
    %201 = math.exp %200 : vector<8x1xf32>
    %202 = arith.subf %187, %199 : vector<8x1xf32>
    %203 = math.exp %202 : vector<8x1xf32>
    %204 = arith.subf %197, %199 : vector<8x1xf32>
    %205 = math.exp %204 : vector<8x1xf32>
    %206 = vector.broadcast %201 : vector<8x1xf32> to vector<8x16xf32>
    %207 = arith.mulf %206, %159 : vector<8x16xf32>
    %208 = vector.broadcast %203 : vector<8x1xf32> to vector<8x16xf32>
    %209 = arith.mulf %208, %160 : vector<8x16xf32>
    %210 = arith.addf %207, %209 : vector<8x16xf32>
    %211 = vector.broadcast %205 : vector<8x1xf32> to vector<8x16xf32>
    %212 = arith.mulf %211, %161 : vector<8x16xf32>
    %213 = arith.addf %210, %212 : vector<8x16xf32>
    %214 = arith.addf %201, %203 : vector<8x1xf32>
    %215 = arith.addf %214, %205 : vector<8x1xf32>
    %216 = vector.broadcast %215 : vector<8x1xf32> to vector<8x16xf32>
    %217 = arith.divf %213, %216 : vector<8x16xf32>
    %c0_86 = arith.constant 0 : index
    %c0_87 = arith.constant 0 : index
    %218 = vector.load %arg16[%c0_86, %c0_87] : memref<16x4xf32, #tpu.memory_space<vmem>>, vector<16x4xf32>
    %cst_88 = arith.constant dense<0.000000e+00> : vector<8x4xf32>
    %219 = tpu.matmul %217, %218, %cst_88 {dimension_numbers = #tpu.dot_dimension_numbers<[1], [0], [0], [1], [0, 0, 1, 1], [], []>, precision = #tpu.contract_precision<fp32>} : vector<8x16xf32>, vector<16x4xf32>, vector<8x4xf32> -> vector<8x4xf32>
    %c0_89 = arith.constant 0 : index
    %c0_90 = arith.constant 0 : index
    %220 = vector.load %arg17[%c0_89, %c0_90] : memref<1x4xf32, #tpu.memory_space<vmem>>, vector<1x4xf32>
    %221 = vector.broadcast %220 : vector<1x4xf32> to vector<8x4xf32>
    %222 = arith.addf %219, %221 : vector<8x4xf32>
    %cst_91 = arith.constant dense<0xFF800000> : vector<8xf32>
    %223 = vector.multi_reduction <maximumf>, %222, %cst_91 [1] : vector<8x4xf32> to vector<8xf32>
    %224 = vector.shape_cast %223 : vector<8xf32> to vector<8x1xf32>
    %225 = vector.broadcast %224 : vector<8x1xf32> to vector<8x4xf32>
    %226 = arith.subf %222, %225 : vector<8x4xf32>
    %227 = math.exp %226 : vector<8x4xf32>
    %cst_92 = arith.constant dense<0.000000e+00> : vector<8xf32>
    %228 = vector.multi_reduction <add>, %227, %cst_92 [1] : vector<8x4xf32> to vector<8xf32>
    %229 = vector.shape_cast %228 : vector<8xf32> to vector<8x1xf32>
    %230 = math.log %229 : vector<8x1xf32>
    %231 = vector.broadcast %230 : vector<8x1xf32> to vector<8x4xf32>
    %232 = arith.subf %226, %231 : vector<8x4xf32>
    %c0_93 = arith.constant 0 : index
    %c0_94 = arith.constant 0 : index
    %233 = vector.load %arg18[%c0_93, %c0_94] : memref<8x4xf32, #tpu.memory_space<vmem>>, vector<8x4xf32>
    tpu.vector_store %arg18[%c0_93, %c0_94], %232 {strides = array<i32>} : memref<8x4xf32, #tpu.memory_space<vmem>>, vector<8x4xf32>,
    return
  }
}

</mosaic_0001>

<bundles_post_ra>
// kernel: tpu_custom_call.1
= control target key start
LH: loop header
LB: loop body
LE: loop exit
PB: predicated region body
PF: predicated region fallthrough
CT: control target
= control target key end

     0   :  { %s7285_s0 = inlined_call_operand.vmem [shape: f32[8,16], index: 0, kind: input, shape index: {}]   ;;  %s7286_s1 = inlined_call_operand.vmem [shape: f32[16,8], index: 1, kind: input, shape index: {}]   ;;  %s7287_s2 = inlined_call_operand.vmem [shape: f32[8,16], index: 2, kind: input, shape index: {}]   ;;  %s7288_s3 = inlined_call_operand.hbm [shape: f32[8,16], index: 3, kind: input, shape index: {}]   ;;  %s7289_s4 = inlined_call_operand.hbm [shape: f32[1,16], index: 4, kind: input, shape index: {}]   ;;  %s7290_s5 = inlined_call_operand.vmem [shape: f32[2,16], index: 5, kind: input, shape index: {}]   ;;  %s7291_s6 = inlined_call_operand.vmem [shape: f32[8,24], index: 6, kind: input, shape index: {}]   ;;  %s7292_s7 = inlined_call_operand.hbm [shape: f32[8,8], index: 7, kind: input, shape index: {}]   ;;  %s7293_s8 = inlined_call_operand.vmem [shape: f32[24,16], index: 8, kind: input, shape index: {}]   ;;  %s7294_s9 = inlined_call_operand.vmem [shape: f32[1,16], index: 9, kind: input, shape index: {}]   ;;  %s7295_s10 = inlined_call_operand.vmem [shape: f32[2,16], index: 10, kind: input, shape index: {}]   ;;  %s7296_s11 = inlined_call_operand.vmem [shape: f32[16,48], index: 11, kind: input, shape index: {}]   ;;  %s7297_s12 = inlined_call_operand.vmem [shape: f32[48,48], index: 12, kind: input, shape index: {}]   ;;  %s7298_s13 = inlined_call_operand.vmem [shape: f32[1,16], index: 13, kind: input, shape index: {}]   ;;  %s7299_s14 = inlined_call_operand.vmem [shape: f32[1,16], index: 14, kind: input, shape index: {}]   ;;  %s7300_s15 = inlined_call_operand.vmem [shape: f32[1,16], index: 15, kind: input, shape index: {}]   ;;  %s7301_s16 = inlined_call_operand.vmem [shape: f32[16,4], index: 16, kind: input, shape index: {}]   ;;  %s7302_s17 = inlined_call_operand.vmem [shape: f32[1,4], index: 17, kind: input, shape index: {}]   ;;  %s7303_s18 = inlined_call_operand.vmem [shape: f32[8,4], index: 18, kind: output, shape index: {}]  }
   0x1   :  { %7305 = sst [smem:[#allocation9_spill]] %s7285_s0 }
   0x2   :  { %7306 = sst [smem:[#allocation10_spill]] %s7286_s1 }
   0x3   :  { %7307 = sst [smem:[#allocation11_spill]] %s7287_s2 }
   0x4   :  { %23 = vsyncpa [#allocation3], 0 }
   0x5   :  { %24 = vsyncpa [#allocation5], 0  ;;  %s6649_s27 = smov [#allocation4]   ;;  %s6650_s29 = smov [#allocation2]  }
   0x6   :  { %s47_s28 = sshll.u32 %s6649_s27, 4  ;;  %s37_s30 = sshll.u32 %s6650_s29, 4  ;;  %s48_s28 = int_to_ptr.vmem [resolvable:$true] %s47_s28  ;;  %s38_s30 = int_to_ptr.vmem [resolvable:$true] %s37_s30 }
   0x7   :  { %s6579_s1 = scalar_lea.hbm %s7289_s4, 16 }
   0x8   :  { %p6580_p0 = scmp.ne.s32.totalorder %s7289_s4, %s6579_s1  ;;  %p6583_p1 = scmp.lt.u32.totalorder %s6579_s1, %s7289_s4 }
   0xa   :  { %p6585_p2 = pnand %p6583_p1, %p6580_p0 }
   0xc   :  { %6588 = shalt.err (!%p6585_p2)
}
   0xd   :  { %s6589_s23 = scalar_lea.vmem %s48_s28, 16  ;;  %s6593_s24 = scalar_lea.vmem %s48_s28, 32 }
   0xe   :  { %p6590_p3 = scmp.ne.s32.totalorder %s48_s28, %s6589_s23  ;;  %p6594_p4 = scmp.lt.s32.totalorder %s48_s28, %s48_s28 }
   0xf   :  { %p6595_p5 = scmp.lt.s32.totalorder %s6593_s24, %s6589_s23 }
  0x11   :  { %p6596_p6 = por %p6595_p5, %p6594_p4 }
  0x13   :  { %p6597_p7 = pnand %p6596_p6, %p6590_p3 }
  0x15   :  { %6600 = shalt.err (!%p6597_p7)
}
  0x16   :  { %50 = dma.hbm_to_vmem [thread:$0]  %s7289_s4, 16, %s48_s28, [#allocation5]  }
  0x17   :  { %s6601_s0 = scalar_lea.hbm %s7288_s3, 128 }
  0x18   :  { %p6602_p8 = scmp.ne.s32.totalorder %s7288_s3, %s6601_s0  ;;  %p6605_p9 = scmp.lt.u32.totalorder %s6601_s0, %s7288_s3 }
  0x1a   :  { %p6607_p10 = pnand %p6605_p9, %p6602_p8 }
  0x1c   :  { %6610 = shalt.err (!%p6607_p10)
}
  0x1d   :  { %s6611_s22 = scalar_lea.vmem %s38_s30, 128  ;;  %p6616_p12 = scmp.lt.s32.totalorder %s38_s30, %s38_s30 }
  0x1e   :  { %p6612_p11 = scmp.ne.s32.totalorder %s38_s30, %s6611_s22  ;;  %p6617_p13 = scmp.lt.s32.totalorder %s6611_s22, %s6611_s22 }
  0x20   :  { %p6618_p0 = por %p6617_p13, %p6616_p12 }
  0x22   :  { %p6619_p1 = pnand %p6618_p0, %p6612_p11 }
  0x24   :  { %6622 = shalt.err (!%p6619_p1)
}
  0x25   :  { %40 = dma.hbm_to_vmem [thread:$0]  %s7288_s3, 128, %s38_s30, [#allocation3]  }
  0x26   :  { %s6651_s2 = smov [#allocation6]   ;;  %s6623_s26 = scalar_lea.hbm %s7292_s7, 128 }
  0x27   :  { %s61_s23 = sshll.u32 %s6651_s2, 4  ;;  %p6624_p2 = scmp.ne.s32.totalorder %s7292_s7, %s6623_s26  ;;  %s62_s23 = int_to_ptr.vmem [resolvable:$true] %s61_s23 }
  0x28   :  { %p6627_p3 = scmp.lt.u32.totalorder %s6623_s26, %s7292_s7 }
  0x2a   :  { %p6629_p4 = pnand %p6627_p3, %p6624_p2 }
  0x2c   :  { %6632 = shalt.err (!%p6629_p4)
}
  0x2d   :  { %s6633_s1 = scalar_lea.vmem %s62_s23, 128  ;;  %p6638_p6 = scmp.lt.s32.totalorder %s62_s23, %s62_s23 }
  0x2e   :  { %p6634_p5 = scmp.ne.s32.totalorder %s62_s23, %s6633_s1  ;;  %p6639_p7 = scmp.lt.s32.totalorder %s6633_s1, %s6633_s1 }
  0x30   :  { %p6640_p8 = por %p6639_p7, %p6638_p6 }
  0x32   :  { %p6641_p9 = pnand %p6640_p8, %p6634_p5 }
  0x34   :  { %6644 = shalt.err (!%p6641_p9)
}
  0x35   :  { %64 = dma.hbm_to_vmem [thread:$0]  %s7292_s7, 128, %s62_s23, [#allocation5]  }
  0x36   :  { %6645 = dma.done.wait [#allocation3], 128  }
  0x37   :  { %6646 = vsyncadd [#allocation3], 4294967168 }
  0x38   :  { %6647 = dma.done.wait [#allocation5], 144  }
  0x39   :  { %6648 = vsyncadd [#allocation5], 4294967152  ;;  %v6652_v0 = vmov 0.0|0.0   ;;  %vm6653_vm0 = vmmov 0   ;;  %v6654_v1 = vmov 0.0   ;;  %vm97_vm1 = vcmask 130048  }
  0x3a   :  { %6258 = vmatprep.subr.bf16.mxu1 %v6652_v0  ;;  %5788 = vmatprep.mubr.msk.f32.mxu1 %vm6653_vm0, %v6654_v1  ;;  %vm566_vm2 = vcmask 64512   ;;  %v95_v2 = vld [vmem:[%s7296_s11] sm:$0xff]  ;;  %v96_v3 = vld [vmem:[%s7296_s11 + $0x8] sm:$0xff]  ;;  %s7308_s2 = sld [smem:[#allocation9_spill]]  ;;  %s7309_s25 = sld [smem:[#allocation10_spill]]  ;;  %vm2535_vm3 = vcmask 195584  }
  0x3b   :  { %6261 = vmatprep.subr.bf16.mxu0 %v6652_v0  ;;  %5795 = vmatprep.mubr.msk.f32.mxu0 %vm6653_vm0, %v6654_v1  ;;  %v102_v5 = vand.u32 4294901760, %v95_v2  ;;  %v105_v6 = vand.u32 4294901760, %v96_v3  ;;  %v563_v8 = vld [vmem:[#allocation2] sm:$0xff]  ;;  %v5564_v50 = vld [vmem:[#allocation4] ss:$0 sm:$0xff]  ;;  %s6655_s0 = smov 120  }
  0x3c   :  { %v6818_v12 = vand.u32 4294901760, %v563_v8  ;;  %v565_v47 = vld [vmem:[%s7290_s5] sm:$0x3]  ;;  %s7310_s22 = sld [smem:[#allocation11_spill]]  ;;  %s6657_s23 = smov 112   ;;  %vm4459_vm14 = vcmask 261120  }
  0x3d   :  { %v6822_v15 = vpack.c.bf16 %v105_v6, %v102_v5  ;;  %v180_v16 = vsub.f32 %v95_v2, %v102_v5  ;;  %v187_v17 = vsub.f32 %v96_v3, %v105_v6  ;;  %v1063_v48 = vsel %vm97_vm1, %v565_v47, 0  ;;  %s6660_s26 = smov 24  }
  0x3e   :  { %v661_v21 = vsub.f32 %v563_v8, %v6818_v12  ;;  %v6874_v53 = vand.u32 4294901760, %v1063_v48  ;;  %vm4461_vm15 = vcmask 326656  }
  0x3f   :  { %6260 = vmatpush3.bf16.msra.mxu1 %v6822_v15  ;;  %v181_v22 = vand.u32 4294901760, %v180_v16  ;;  %v188_v23 = vand.u32 4294901760, %v187_v17  ;;  %v6265_v43 = vpack.c.bf16 %v187_v17, %v180_v16 }
  0x40   :  { %v94_v4 = vld [vmem:[%s7308_s2] sm:$0xff]  ;;  %v561_v10 = vld [vmem:[%s7309_s25 + $0x8] sm:$0xff]  ;;  %5826 = vmatprep.subr.mxu1 %v6818_v12  ;;  %v662_v27 = vand.u32 4294901760, %v661_v21  ;;  %v1139_v55 = vsub.f32 %v1063_v48, %v6874_v53  ;;  %s6656_s2 = smov 16  }
  0x41   :  { %v99_v7 = vsel %vm97_vm1, %v94_v4, 0  ;;  %v560_v9 = vld [vmem:[%s7309_s25] sm:$0xff]  ;;  %v571_v14 = vsel %vm566_vm2, %v561_v10, 0  ;;  %v182_v28 = vsub.f32 %v180_v16, %v181_v22  ;;  %v189_v29 = vsub.f32 %v187_v17, %v188_v23 }
  0x42   :  { %v6816_v11 = vand.u32 4294901760, %v99_v7  ;;  %v568_v13 = vsel %vm566_vm2, %v560_v9, 0  ;;  %v6827_v20 = vand.u32 4294901760, %v571_v14  ;;  %v663_v33 = vsub.f32 %v661_v21, %v662_v27 }
  0x43   :  { %v6824_v18 = vand.u32 4294901760, %v568_v13  ;;  %v183_v34 = vand.u32 4294901760, %v182_v28  ;;  %v190_v35 = vand.u32 4294901760, %v189_v29  ;;  %v6271_v44 = vpack.c.bf16 %v188_v23, %v181_v22 }
  0x44   :  { %v169_v19 = vsub.f32 %v99_v7, %v6816_v11  ;;  %v650_v26 = vsub.f32 %v571_v14, %v6827_v20  ;;  %v664_v39 = vand.u32 4294901760, %v663_v33  ;;  %v1140_v63 = vand.u32 4294901760, %v1139_v55  ;;  %v2531_v33 = vld [vmem:[%s7293_s8 + $0x8] sm:$0xff] }
  0x45   :  { %v640_v24 = vsub.f32 %v568_v13, %v6824_v18  ;;  %v6262_v40 = vpack.c.bf16 %v190_v35, %v183_v34  ;;  %v2532_v34 = vld [vmem:[%s7293_s8 + $0x10] sm:$0xff] }
  0x46   :  { %v170_v25 = vand.u32 4294901760, %v169_v19  ;;  %v651_v32 = vand.u32 4294901760, %v650_v26 }
  0x47   :  { %v641_v30 = vand.u32 4294901760, %v640_v24  ;;  %6263 = vmatpush3.bf16.msra.mxu0 %v6262_v40 }
  0x48   :  { %v171_v31 = vsub.f32 %v169_v19, %v170_v25  ;;  %v652_v38 = vsub.f32 %v650_v26, %v651_v32  ;;  %6264 = vmatprep.subr.bf16.mxu0 %v6652_v0 }
  0x49   :  { %v642_v36 = vsub.f32 %v640_v24, %v641_v30 }
  0x4a   :  { %v172_v37 = vand.u32 4294901760, %v171_v31  ;;  %v653_v42 = vand.u32 4294901760, %v652_v38  ;;  %5796 = vmatmul.mubr.f32.vlgmr.msra.gmra.mrb[0].mxu0 %v6816_v11  ;;  %v2528_v38 = vld [vmem:[%s7291_s6] sm:$0xff]  ;;  %s6662_s6 = smov 32  }
  0x4b   :  { %v643_v41 = vand.u32 4294901760, %v642_v36  ;;  %6266 = vmatpush3.bf16.msra.mxu0 %v6265_v43  ;;  %5802 = vmatprep.mubr.msk.f32.mxu0 %vm6653_vm0, %v6654_v1  ;;  %v2543_v36 = vand.u32 4294901760, %v2531_v33 }
  0x4c   :  { %5789 = vmatmul.mubr.f32.vlgmr.msra.gmra.mrb[0].mxu1 %v172_v37  ;;  %6267 = vmatprep.subr.bf16.mxu0 %v6652_v0  ;;  %v2546_v37 = vand.u32 4294901760, %v2532_v34 }
  0x4d   :  { %5827 = vmatpush3.msra.mxu1 %v6818_v12  ;;  %5828 = vmatprep.mubr.f32.mxu1 %v643_v41 }
  0x4e   :  { %5831 = vmatprep.subr.mxu1 %v664_v39  ;;  %v2633_v43 = vsub.f32 %v2532_v34, %v2546_v37 }
  0x50   :  { %5829 = vmatmul.mubr.f32.vlgmr.msra.gmra.mrb[2].mxu1 %v653_v42  ;;  %v2626_v42 = vsub.f32 %v2531_v33, %v2543_v36 }
  0x51   :  { %5832 = vmatpush3.msra.mxu1 %v664_v39  ;;  %5833 = vmatprep.mubr.f32.mxu1 %v6824_v18  ;;  %v2537_v39 = vsel %vm2535_vm3, %v2528_v38, 0  ;;  %v5567_v38 = vld [vmem:[%s7294_s9] ss:$0 sm:$0xff]  ;;  %s6658_s9 = smov 104  }
  0x52   :  { %5836 = vmatprep.subr.mxu1 %v661_v21  ;;  %5803 = vmatmul.mubr.f32.vlgmr.msra.gmra.mrb[0].mxu0 %v169_v19 }
  0x53   :  { %6269 = vmatpush3.bf16.msra.mxu0 %v6822_v15  ;;  %5809 = vmatprep.mubr.msk.f32.mxu0 %vm6653_vm0, %v6654_v1 }
  0x54   :  { %6270 = vmatprep.subr.bf16.mxu0 %v6652_v0 }
  0x58   :  { %5834 = vmatmul.mubr.f32.vlgmr.msra.gmra.mrb[2].mxu1 %v6827_v20 }
  0x59   :  { %5837 = vmatpush3.msra.mxu1 %v661_v21  ;;  %5838 = vmatprep.mubr.f32.mxu1 %v640_v24 }
  0x5a   :  { %5841 = vmatprep.subr.mxu1 %v6818_v12  ;;  %5810 = vmatmul.mubr.f32.vlgmr.msra.gmra.mrb[0].mxu0 %v170_v25 }
  0x5b   :  { %6272 = vmatpush3.bf16.msra.mxu0 %v6271_v44  ;;  %5816 = vmatprep.mubr.msk.f32.mxu0 %vm6653_vm0, %v6654_v1  ;;  %v2607_v44 = vand.u32 4294901760, %v2537_v39 }
  0x5c   :  { %6273 = vmatprep.subr.bf16.mxu0 %v6652_v0 }
  0x5d   :  { %v2608_v47 = vsub.f32 %v2537_v39, %v2607_v44 }
  0x60   :  { %5839 = vmatmul.mubr.f32.vlgmr.msra.gmra.mrb[2].mxu1 %v650_v26 }
  0x61   :  { %5842 = vmatpush3.msra.mxu1 %v6818_v12  ;;  %5843 = vmatprep.mubr.f32.mxu1 %v641_v30 }
  0x62   :  { %5846 = vmatprep.subr.mxu1 %v662_v27  ;;  %5817 = vmatmul.mubr.f32.vlgmr.msra.gmra.mrb[0].mxu0 %v6816_v11 }
  0x63   :  { %6275 = vmatpush3.bf16.msra.mxu0 %v6822_v15  ;;  %5823 = vmatprep.mubr.msk.f32.mxu0 %vm6653_vm0, %v6654_v1 }
  0x64   :  { %6294 = vmatprep.subr.bf16.mxu0 %v6652_v0 }
  0x68   :  { %5844 = vmatmul.mubr.f32.vlgmr.msra.gmra.mrb[2].mxu1 %v651_v32  ;;  %v2530_v32 = vld [vmem:[%s7293_s8] sm:$0xff] }
  0x69   :  { %5847 = vmatpush3.msra.mxu1 %v662_v27  ;;  %5848 = vmatprep.mubr.f32.mxu1 %v6824_v18  ;;  %v2540_v35 = vand.u32 4294901760, %v2530_v32 }
  0x6a   :  { %5851 = vmatprep.subr.mxu1 %v6818_v12  ;;  %5824 = vmatmul.mubr.f32.vlgmr.msra.gmra.mrb[0].mxu0 %v6816_v11 }
  0x6b   :  { %5902 = vmatprep.mubr.msk.f32.mxu0 %vm6653_vm0, %v6654_v1  ;;  %v6331_v40 = vpack.c.bf16 %v2543_v36, %v2540_v35  ;;  %v2619_v41 = vsub.f32 %v2530_v32, %v2540_v35 }
  0x70   :  { %5849 = vmatmul.mubr.f32.vlgmr.msra.gmra.mrb[2].mxu1 %v6827_v20 }
  0x71   :  { %5852 = vmatpush3.msra.mxu1 %v6818_v12  ;;  %5853 = vmatprep.mubr.f32.mxu1 %v6824_v18  ;;  %v1141_v12 = vsub.f32 %v1139_v55, %v1140_v63 }
  0x72   :  { %6276 = vmatprep.subr.bf16.mxu1 %v6652_v0 }
  0x73   :  { %v1142_v23 = vand.u32 4294901760, %v1141_v12  ;;  %v562_v12 = vld [vmem:[%s7310_s22] sm:$0xff] }
  0x74   :  { %vm1548_vm4 = vcmp.gt.f32.partialorder %v562_v12, 0.0 }
  0x78   :  { %5854 = vmatmul.mubr.f32.vlgmr.msra.gmra.mrb[2].mxu1 %v6827_v20 }
  0x79   :  { %5860 = vmatprep.mubr.msk.f32.mxu1 %vm6653_vm0, %v6654_v1 }
 0x11f   :  { %v174_v45 = vpop.f32.mrb[0].mxu1 }
 0x120   :  { %v5790_v46 = vpop.f32.mrb[1].mxu1 }
 0x121   :  { %v2627_v46 = vand.u32 4294901760, %v2626_v42 }
 0x13d   :  { %v556_v49 = vpop.f32.mrb[0].mxu0 }
 0x13e   :  { %v6872_v51 = vadd.f32 %v556_v49, %v174_v45  ;;  %v5825_v52 = vpop.f32.mrb[1].mxu0  ;;  %v2620_v45 = vand.u32 4294901760, %v2619_v41  ;;  %v2628_v49 = vsub.f32 %v2626_v42, %v2627_v46 }
 0x13f   :  { %v2609_v52 = vand.u32 4294901760, %v2608_v47 }
 0x140   :  { %v1536_v54 = vmul.f32 %v6872_v51, %v5564_v50  ;;  %v2621_v48 = vsub.f32 %v2619_v41, %v2620_v45  ;;  %v2634_v50 = vand.u32 4294901760, %v2633_v43 }
 0x142   :  { %2029 = vrot.lane.b32.xlu0 %v1536_v54, %s6655_s0  ;;  %v1537_v29 = vsel %vm566_vm2, %v1536_v54, 0.0  ;;  %v2629_v54 = vand.u32 4294901760, %v2628_v49 }
 0x14b   :  { %v5855_v56 = vpop.f32.mrb[2].mxu1 }
 0x14c   :  { %v1069_v57 = vsel %vm97_vm1, %v5855_v56, 0  ;;  %v1568_v58 = vand.u32 4294901760, %v5855_v56  ;;  %v6880_v59 = vpop.f32.mrb[3].mxu1 }
 0x14d   :  { %v1075_v60 = vand.u32 4294901760, %v1069_v57  ;;  %v1066_v61 = vsel %vm97_vm1, %v6880_v59, 0  ;;  %v1565_v62 = vand.u32 4294901760, %v6880_v59 }
 0x14e   :  { %v6885_v2 = vsub.f32 %v5855_v56, %v1568_v58  ;;  %v1072_v3 = vand.u32 4294901760, %v1066_v61 }
 0x14f   :  { %v1157_v4 = vsub.f32 %v1069_v57, %v1075_v60  ;;  %v6888_v5 = vsub.f32 %v6880_v59, %v1565_v62  ;;  %v6890_v6 = vpack.c.bf16 %v1568_v58, %v1565_v62  ;;  %v2635_v57 = vsub.f32 %v2633_v43, %v2634_v50 }
 0x150   :  { %v1651_v7 = vand.u32 4294901760, %v6885_v2  ;;  %v1150_v8 = vsub.f32 %v1066_v61, %v1072_v3  ;;  %v6277_v9 = vpack.c.bf16 %v1075_v60, %v1072_v3  ;;  %v6337_v61 = vpack.c.bf16 %v2626_v42, %v2619_v41 }
 0x151   :  { %v1158_v10 = vand.u32 4294901760, %v1157_v4  ;;  %v1644_v11 = vand.u32 4294901760, %v6888_v5  ;;  %6296 = vmatpush3.bf16.msra.mxu0 %v6890_v6  ;;  %v6301_v13 = vpack.c.bf16 %v6885_v2, %v6888_v5  ;;  %v2636_v60 = vand.u32 4294901760, %v2635_v57 }
 0x152   :  { %v1151_v14 = vand.u32 4294901760, %v1150_v8  ;;  %6278 = vmatpush3.bf16.xpose.msra.mxu1 %v6277_v9  ;;  %v6283_v15 = vpack.c.bf16 %v1157_v4, %v1150_v8  ;;  %6297 = vmatprep.subr.bf16.mxu0 %v6652_v0  ;;  %v1652_v16 = vsub.f32 %v6885_v2, %v1651_v7  ;;  %v6343_v62 = vpack.c.bf16 %v2627_v46, %v2620_v45 }
 0x153   :  { %6279 = vmatprep.subr.bf16.mxu1 %v6652_v0  ;;  %v1159_v17 = vsub.f32 %v1157_v4, %v1158_v10  ;;  %v1645_v18 = vsub.f32 %v6888_v5, %v1644_v11  ;;  %v6901_v19 = vpack.c.bf16 %v1651_v7, %v1644_v11 }
 0x154   :  { %v1152_v20 = vsub.f32 %v1150_v8, %v1151_v14  ;;  %v6289_v21 = vpack.c.bf16 %v1158_v10, %v1151_v14  ;;  %v1653_v22 = vand.u32 4294901760, %v1652_v16 }
 0x155   :  { %v1160_v24 = vand.u32 4294901760, %v1159_v17  ;;  %v1646_v25 = vand.u32 4294901760, %v1645_v18 }
 0x156   :  { %v1153_v26 = vand.u32 4294901760, %v1152_v20 }
 0x157   :  { %v6903_v27 = vpack.c.bf16 %v1653_v22, %v1646_v25 }
 0x158   :  { %v6280_v28 = vpack.c.bf16 %v1160_v24, %v1153_v26 }
 0x159   :  { %5861 = vmatmul.mubr.f32.vlgmr.msra.gmra.mrb[4].mxu1 %v1142_v23 }
 0x15a   :  { %6281 = vmatpush3.bf16.xpose.msra.mxu1 %v6280_v28  ;;  %5867 = vmatprep.mubr.msk.f32.mxu1 %vm6653_vm0, %v6654_v1 }
 0x15b   :  { %6282 = vmatprep.subr.bf16.mxu1 %v6652_v0 }
 0x161   :  { %5868 = vmatmul.mubr.f32.vlgmr.msra.gmra.mrb[4].mxu1 %v6874_v53  ;;  %1538 = vadd.xlane.f32.xlu0 %v1537_v29 }
 0x162   :  { %6284 = vmatpush3.bf16.xpose.msra.mxu1 %v6283_v15  ;;  %5874 = vmatprep.mubr.msk.f32.mxu1 %vm6653_vm0, %v6654_v1 }
 0x163   :  { %6285 = vmatprep.subr.bf16.mxu1 %v6652_v0 }
 0x169   :  { %5875 = vmatmul.mubr.f32.vlgmr.msra.gmra.mrb[4].mxu1 %v1139_v55  ;;  %v2610_v55 = vsub.f32 %v2608_v47, %v2609_v52 }
 0x16a   :  { %6287 = vmatpush3.bf16.xpose.msra.mxu1 %v6277_v9  ;;  %5881 = vmatprep.mubr.msk.f32.mxu1 %vm6653_vm0, %v6654_v1 }
 0x16b   :  { %6288 = vmatprep.subr.bf16.mxu1 %v6652_v0  ;;  %v2611_v58 = vand.u32 4294901760, %v2610_v55 }
 0x171   :  { %5882 = vmatmul.mubr.f32.vlgmr.msra.gmra.mrb[4].mxu1 %v1140_v63  ;;  %v1540_v63 = vlaneseq }
 0x172   :  { %6290 = vmatpush3.bf16.xpose.msra.mxu1 %v6289_v21  ;;  %5888 = vmatprep.mubr.msk.f32.mxu1 %vm6653_vm0, %v6654_v1 }
 0x173   :  { %6291 = vmatprep.subr.bf16.mxu1 %v6652_v0  ;;  %v6965_v3 = vshrl.u32 %v1540_v63, 7 }
 0x175   :  { %v1542_v4 = vsub.s32 0, %v6965_v3  ;;  %v2037_v7 = vsub.s32 1, %v6965_v3 }
 0x177   :  { %2057 = vrot.lane.b32.xlu0 %v5855_v56, %s6655_s0 }
 0x179   :  { %5889 = vmatmul.mubr.f32.vlgmr.msra.gmra.mrb[4].mxu1 %v6874_v53 }
 0x17a   :  { %6293 = vmatpush3.bf16.xpose.msra.mxu1 %v6277_v9  ;;  %5895 = vmatprep.mubr.msk.f32.mxu1 %vm6653_vm0, %v6654_v1 }
 0x17b   :  { %6330 = vmatprep.subr.bf16.mxu1 %v6652_v0 }
 0x181   :  { %5896 = vmatmul.mubr.f32.vlgmr.msra.gmra.mrb[4].mxu1 %v6874_v53  ;;  %v2622_v53 = vand.u32 4294901760, %v2621_v48 }
 0x182   :  { %5988 = vmatprep.mubr.msk.f32.mxu1 %vm6653_vm0, %v6654_v1  ;;  %6332 = vmatpush3.bf16.msra.mxu1 %v6331_v40 }
 0x183   :  { %5986 = vmatprep.subr.mxu1 %v6654_v1  ;;  %v6334_v56 = vpack.c.bf16 %v2629_v54, %v2622_v53 }
 0x186   :  { %5987 = vmatpush3.msra.mxu1 %v2546_v37 }
 0x187   :  { %6333 = vmatprep.subr.bf16.mxu1 %v6652_v0  ;;  %5989 = vmatmul.mubr.f32.vlgmr.msra.gmra.mrb[6].mxu1 %v2611_v58 }
 0x188   :  { %6335 = vmatpush3.bf16.msra.mxu1 %v6334_v56  ;;  %5997 = vmatprep.mubr.msk.f32.mxu1 %vm6653_vm0, %v6654_v1 }
 0x189   :  { %5995 = vmatprep.subr.mxu1 %v6654_v1 }
 0x18c   :  { %5996 = vmatpush3.msra.mxu1 %v2636_v60 }
 0x18d   :  { %6336 = vmatprep.subr.bf16.mxu1 %v6652_v0 }
 0x18f   :  { %5998 = vmatmul.mubr.f32.vlgmr.msra.gmra.mrb[6].mxu1 %v2607_v44 }
 0x190   :  { %6338 = vmatpush3.bf16.msra.mxu1 %v6337_v61  ;;  %6006 = vmatprep.mubr.msk.f32.mxu1 %vm6653_vm0, %v6654_v1 }
 0x191   :  { %6004 = vmatprep.subr.mxu1 %v6654_v1 }
 0x194   :  { %6005 = vmatpush3.msra.mxu1 %v2633_v43 }
 0x195   :  { %6339 = vmatprep.subr.bf16.mxu1 %v6652_v0 }
 0x197   :  { %6007 = vmatmul.mubr.f32.vlgmr.msra.gmra.mrb[6].mxu1 %v2608_v47 }
 0x198   :  { %6341 = vmatpush3.bf16.msra.mxu1 %v6331_v40  ;;  %6015 = vmatprep.mubr.msk.f32.mxu1 %vm6653_vm0, %v6654_v1 }
 0x199   :  { %6013 = vmatprep.subr.mxu1 %v6654_v1 }
 0x19c   :  { %6014 = vmatpush3.msra.mxu1 %v2546_v37 }
 0x19d   :  { %6342 = vmatprep.subr.bf16.mxu1 %v6652_v0 }
 0x19f   :  { %6016 = vmatmul.mubr.f32.vlgmr.msra.gmra.mrb[6].mxu1 %v2609_v52 }
 0x1a0   :  { %6344 = vmatpush3.bf16.msra.mxu1 %v6343_v62  ;;  %6024 = vmatprep.mubr.msk.f32.mxu1 %vm6653_vm0, %v6654_v1 }
 0x1a1   :  { %6022 = vmatprep.subr.mxu1 %v6654_v1 }
 0x1a4   :  { %6023 = vmatpush3.msra.mxu1 %v2634_v50 }
 0x1a5   :  { %6345 = vmatprep.subr.bf16.mxu1 %v6652_v0 }
 0x1a7   :  { %6025 = vmatmul.mubr.f32.vlgmr.msra.gmra.mrb[6].mxu1 %v2607_v44 }
 0x1a8   :  { %6347 = vmatpush3.bf16.msra.mxu1 %v6331_v40  ;;  %6033 = vmatprep.mubr.msk.f32.mxu1 %vm6653_vm0, %v6654_v1 }
 0x1a9   :  { %6031 = vmatprep.subr.mxu1 %v6654_v1 }
 0x1ac   :  { %6032 = vmatpush3.msra.mxu1 %v2546_v37 }
 0x1ad   :  { %6096 = vmatprep.subr.mxu1 %v6654_v1 }
 0x1af   :  { %6034 = vmatmul.mubr.f32.vlgmr.msra.gmra.mrb[6].mxu1 %v2607_v44 }
 0x1b0   :  { %6098 = vmatprep.mubr.msk.f32.mxu1 %vm6653_vm0, %v6654_v1 }
 0x1b4   :  { %v2030_v30 = vpop.permute.xlu0 %2029 }
 0x1b5   :  { %v2032_v31 = vsel %vm566_vm2, %v2030_v30, 0.0 }
 0x1b6   :  { %2033 = vadd.xlane.f32.xlu1 %v2032_v31 }
 0x1ee   :  { %v1539_v14 = vpop.xlane.xlu0 %1538 }
 0x1f2   :  { %v2058_v55 = vpop.permute.xlu0 %2057 }
 0x1f3   :  { %v2068_v5 = vand.u32 4294901760, %v2058_v55 }
 0x1f5   :  { %v2150_v58 = vsub.f32 %v2058_v55, %v2068_v5 }
 0x1f7   :  { %v2151_v62 = vand.u32 4294901760, %v2150_v58 }
 0x243   :  { %v2034_v15 = vpop.xlane.xlu1 %2033 }
 0x254   :  { %v1526_v8 = vpop.f32.mrb[4].mxu1 }
 0x255   :  { %v1543_v9 = vrot.slane %v1526_v8, %v1542_v4  ;;  %v2038_v10 = vrot.slane %v1526_v8, %v2037_v7  ;;  %v5897_v11 = vpop.f32.mrb[5].mxu1  ;;  %v2152_v8 = vsub.f32 %v2150_v58, %v2151_v62 }
 0x257   :  { %v1544_v16 = vadd.f32 %v1543_v9, %v1539_v14  ;;  %v2039_v17 = vadd.f32 %v2038_v10, %v2034_v15  ;;  %v2153_v12 = vand.u32 4294901760, %v2152_v8 }
 0x259   :  { %vm1545_vm5 = vcmp.gt.f32.partialorder %v1544_v16, 0.0  ;;  %v1546_v18 = vmul.f32 0.2, %v1544_v16  ;;  %vm2040_vm6 = vcmp.gt.f32.partialorder %v2039_v17, 0.0  ;;  %v2041_v20 = vmul.f32 0.2, %v2039_v17 }
 0x25b   :  { %v1547_v21 = vsel %vm1545_vm5, %v1544_v16, %v1546_v18  ;;  %v2042_v22 = vsel %vm2040_vm6, %v2039_v17, %v2041_v20  ;;  %v2534_v16 = vld [vmem:[%s7295_s10] sm:$0x3]  ;;  %s6659_s10 = smov 96  }
 0x25c   :  { %v1549_v23 = vsel %vm1548_vm4, %v1547_v21, -9e+15  ;;  %v2043_v25 = vsel %vm1548_vm4, %v2042_v22, -9e+15  ;;  %v3012_v17 = vsel %vm97_vm1, %v2534_v16, 0 }
 0x25d   :  { %v1550_v24 = vsel %vm97_vm1, %v1549_v23, -inf  ;;  %v2044_v26 = vsel %vm97_vm1, %v2043_v25, -inf  ;;  %v3083_v21 = vand.u32 4294901760, %v3012_v17 }
 0x25e   :  { %1551 = vmax.xlane.f32.xlu1 %v1550_v24 }
 0x262   :  { %2045 = vmax.xlane.f32.xlu1 %v2044_v26 }
 0x282   :  { %v6986_v39 = vpop.f32.mrb[6].mxu1 }
 0x283   :  { %v6035_v40 = vpop.f32.mrb[7].mxu1  ;;  %v3015_v20 = vsel %vm97_vm1, %v6986_v39, 0 }
 0x284   :  { %v3018_v22 = vand.u32 4294901760, %v3015_v20 }
 0x286   :  { %v3095_v24 = vsub.f32 %v3015_v20, %v3018_v22 }
 0x288   :  { %v3096_v26 = vand.u32 4294901760, %v3095_v24 }
 0x2eb   :  { %v1552_v28 = vpop.xlane.xlu1 %1551 }
 0x2ec   :  { %v1553_v29 = vsub.f32 %v1549_v23, %v1552_v28  ;;  %v3084_v23 = vsub.f32 %v3012_v17, %v3083_v21 }
 0x2ee   :  { %v1554_v30 = vmul.f32 1.442695, %v1553_v29  ;;  %v3097_v29 = vsub.f32 %v3095_v24, %v3096_v26 }
 0x2ef   :  { %v2046_v31 = vpop.xlane.xlu1 %2045 }
 0x2f0   :  { %6543 = vpow2.f32 %v1554_v30  ;;  %v2047_v32 = vsub.f32 %v2043_v25, %v2046_v31  ;;  %v3085_v25 = vand.u32 4294901760, %v3084_v23  ;;  %v3098_v31 = vand.u32 4294901760, %v3097_v29 }
 0x2f2   :  { %v2048_v33 = vmul.f32 1.442695, %v2047_v32  ;;  %v3086_v28 = vsub.f32 %v3084_v23, %v3085_v25 }
 0x2f4   :  { %6545 = vpow2.f32 %v2048_v33  ;;  %v3087_v30 = vand.u32 4294901760, %v3086_v28 }
 0x2fa   :  { %v6544_v34 = vpop.eup %6543 }
 0x2fb   :  { %v1556_v35 = vsel %vm97_vm1, %v6544_v34, 0.0 }
 0x2fc   :  { %1557 = vadd.xlane.f32.xlu1 %v1556_v35 }
 0x2fe   :  { %v6546_v36 = vpop.eup %6545 }
 0x2ff   :  { %v2050_v37 = vsel %vm97_vm1, %v6546_v36, 0.0 }
 0x300   :  { %2051 = vadd.xlane.f32.xlu1 %v2050_v37 }
 0x311   :  { %2055 = vrot.lane.b32.xlu1 %v6880_v59, %s6655_s0 }
 0x315   :  { %3468 = vrot.lane.b32.xlu1 %v5567_v38, %s6656_s2 }
 0x389   :  { %v1558_v41 = vpop.xlane.xlu1 %1557 }
 0x38a   :  { %6547 = vrcp.f32 %v1558_v41 }
 0x38d   :  { %v2052_v42 = vpop.xlane.xlu1 %2051 }
 0x38e   :  { %6549 = vrcp.f32 %v2052_v42 }
 0x391   :  { %v2056_v43 = vpop.permute.xlu1 %2055 }
 0x392   :  { %v2065_v56 = vand.u32 4294901760, %v2056_v43 }
 0x394   :  { %v6548_v44 = vpop.eup %6547  ;;  %v2143_v57 = vsub.f32 %v2056_v43, %v2065_v56  ;;  %v6313_v10 = vpack.c.bf16 %v2068_v5, %v2065_v56 }
 0x395   :  { %v1560_v45 = vmul.f32 %v6548_v44, %v6544_v34  ;;  %v3469_v46 = vpop.permute.xlu1 %3468 }
 0x396   :  { %v3471_v47 = vmul.f32 %v6872_v51, %v3469_v46  ;;  %v2144_v61 = vand.u32 4294901760, %v2143_v57  ;;  %v6319_v15 = vpack.c.bf16 %v2150_v58, %v2143_v57  ;;  %v2529_v46 = vld [vmem:[#allocation6] sm:$0xff] }
 0x397   :  { %v1562_v59 = vsel %vm97_vm1, %v1560_v45, 0  ;;  %vm3487_vm7 = vcmp.gt.f32.partialorder %v2529_v46, 0.0 }
 0x398   :  { %3473 = vrot.lane.b32.xlu1 %v3471_v47, %s6657_s23  ;;  %v1631_v48 = vand.u32 4294901760, %v1562_v59  ;;  %v6550_v54 = vpop.eup %6549  ;;  %v2145_v63 = vsub.f32 %v2143_v57, %v2144_v61  ;;  %v6325_v18 = vpack.c.bf16 %v2151_v62, %v2144_v61 }
 0x39a   :  { %v1632_v49 = vsub.f32 %v1562_v59, %v1631_v48  ;;  %v2146_v11 = vand.u32 4294901760, %v2145_v63 }
 0x39c   :  { %3954 = vrot.lane.b32.xlu1 %v3471_v47, %s6658_s9  ;;  %v1633_v50 = vand.u32 4294901760, %v1632_v49  ;;  %v6316_v14 = vpack.c.bf16 %v2153_v12, %v2146_v11 }
 0x39e   :  { %v1634_v52 = vsub.f32 %v1632_v49, %v1633_v50 }
 0x3a0   :  { %v1635_v53 = vand.u32 4294901760, %v1634_v52 }
 0x3a2   :  { %5903 = vmatmul.mubr.f32.vlgmr.msra.gmra.mrb[2].mxu0 %v1635_v53 }
 0x3a3   :  { %6299 = vmatpush3.bf16.msra.mxu0 %v6903_v27  ;;  %5909 = vmatprep.mubr.msk.f32.mxu0 %vm6653_vm0, %v6654_v1  ;;  %v2054_v27 = vmul.f32 %v6550_v54, %v6546_v36  ;;  %v7059_v36 = vand.u32 4294901760, %v6986_v39 }
 0x3a4   :  { %6300 = vmatprep.subr.bf16.mxu0 %v6652_v0 }
 0x3a5   :  { %v2062_v2 = vsel %vm97_vm1, %v2054_v27, 0 }
 0x3aa   :  { %5910 = vmatmul.mubr.f32.vlgmr.msra.gmra.mrb[2].mxu0 %v1631_v48 }
 0x3ab   :  { %6302 = vmatpush3.bf16.msra.mxu0 %v6301_v13  ;;  %5916 = vmatprep.mubr.msk.f32.mxu0 %vm6653_vm0, %v6654_v1  ;;  %v2131_v13 = vand.u32 4294901760, %v2062_v2 }
 0x3ac   :  { %6303 = vmatprep.subr.bf16.mxu0 %v6652_v0 }
 0x3ad   :  { %v2132_v60 = vsub.f32 %v2062_v2, %v2131_v13 }
 0x3b2   :  { %5917 = vmatmul.mubr.f32.vlgmr.msra.gmra.mrb[2].mxu0 %v1632_v49 }
 0x3b3   :  { %6305 = vmatpush3.bf16.msra.mxu0 %v6890_v6  ;;  %5923 = vmatprep.mubr.msk.f32.mxu0 %vm6653_vm0, %v6654_v1 }
 0x3b4   :  { %6306 = vmatprep.subr.bf16.mxu0 %v6652_v0 }
 0x3ba   :  { %5924 = vmatmul.mubr.f32.vlgmr.msra.gmra.mrb[2].mxu0 %v1633_v50 }
 0x3bb   :  { %6308 = vmatpush3.bf16.msra.mxu0 %v6901_v19  ;;  %5930 = vmatprep.mubr.msk.f32.mxu0 %vm6653_vm0, %v6654_v1  ;;  %v2133_v19 = vand.u32 4294901760, %v2132_v60 }
 0x3bc   :  { %6309 = vmatprep.subr.bf16.mxu0 %v6652_v0 }
 0x3bd   :  { %v2134_v9 = vsub.f32 %v2132_v60, %v2133_v19 }
 0x3c2   :  { %5931 = vmatmul.mubr.f32.vlgmr.msra.gmra.mrb[2].mxu0 %v1631_v48 }
 0x3c3   :  { %6311 = vmatpush3.bf16.msra.mxu0 %v6890_v6  ;;  %5937 = vmatprep.mubr.msk.f32.mxu0 %vm6653_vm0, %v6654_v1  ;;  %v2135_v6 = vand.u32 4294901760, %v2134_v9 }
 0x3c4   :  { %6312 = vmatprep.subr.bf16.mxu0 %v6652_v0 }
 0x3ca   :  { %5938 = vmatmul.mubr.f32.vlgmr.msra.gmra.mrb[2].mxu0 %v1631_v48 }
 0x3cb   :  { %6314 = vmatpush3.bf16.msra.mxu0 %v6313_v10  ;;  %5944 = vmatprep.mubr.msk.f32.mxu0 %vm6653_vm0, %v6654_v1 }
 0x3cc   :  { %6315 = vmatprep.subr.bf16.mxu0 %v6652_v0 }
 0x3ce   :  { %5945 = vmatmul.mubr.f32.vlgmr.msra.gmra.mrb[4].mxu0 %v2135_v6 }
 0x3cf   :  { %6317 = vmatpush3.bf16.msra.mxu0 %v6316_v14  ;;  %5951 = vmatprep.mubr.msk.f32.mxu0 %vm6653_vm0, %v6654_v1 }
 0x3d0   :  { %6318 = vmatprep.subr.bf16.mxu0 %v6652_v0 }
 0x3d6   :  { %5952 = vmatmul.mubr.f32.vlgmr.msra.gmra.mrb[4].mxu0 %v2131_v13 }
 0x3d7   :  { %6320 = vmatpush3.bf16.msra.mxu0 %v6319_v15  ;;  %5958 = vmatprep.mubr.msk.f32.mxu0 %vm6653_vm0, %v6654_v1 }
 0x3d8   :  { %6321 = vmatprep.subr.bf16.mxu0 %v6652_v0 }
 0x3de   :  { %5959 = vmatmul.mubr.f32.vlgmr.msra.gmra.mrb[4].mxu0 %v2132_v60 }
 0x3df   :  { %6323 = vmatpush3.bf16.msra.mxu0 %v6313_v10  ;;  %5965 = vmatprep.mubr.msk.f32.mxu0 %vm6653_vm0, %v6654_v1 }
 0x3e0   :  { %6324 = vmatprep.subr.bf16.mxu0 %v6652_v0 }
 0x3e6   :  { %5966 = vmatmul.mubr.f32.vlgmr.msra.gmra.mrb[4].mxu0 %v2133_v19 }
 0x3e7   :  { %6326 = vmatpush3.bf16.msra.mxu0 %v6325_v18  ;;  %5972 = vmatprep.mubr.msk.f32.mxu0 %vm6653_vm0, %v6654_v1 }
 0x3e8   :  { %6327 = vmatprep.subr.bf16.mxu0 %v6652_v0 }
 0x3ee   :  { %5973 = vmatmul.mubr.f32.vlgmr.msra.gmra.mrb[4].mxu0 %v2131_v13 }
 0x3ef   :  { %6329 = vmatpush3.bf16.msra.mxu0 %v6313_v10  ;;  %5979 = vmatprep.mubr.msk.f32.mxu0 %vm6653_vm0, %v6654_v1 }
 0x3f0   :  { %6036 = vmatprep.subr.mxu0 %v6654_v1 }
 0x3f6   :  { %5980 = vmatmul.mubr.f32.vlgmr.msra.gmra.mrb[4].mxu0 %v2131_v13 }
 0x3f7   :  { %6038 = vmatprep.mubr.msk.f32.mxu0 %vm6653_vm0, %v6654_v1 }
 0x3f8   :  { %6037 = vmatpush3.xpose.msra.mxu0 %v3018_v22 }
 0x3f9   :  { %6041 = vmatprep.subr.mxu0 %v6654_v1 }
 0x3fb   :  { %6039 = vmatmul.mubr.f32.vlgmr.msra.gmra.mrb[6].mxu0 %v3087_v30 }
 0x3fc   :  { %6042 = vmatpush3.xpose.msra.mxu0 %v3098_v31  ;;  %6043 = vmatprep.mubr.msk.f32.mxu0 %vm6653_vm0, %v6654_v1 }
 0x3fd   :  { %6046 = vmatprep.subr.mxu0 %v6654_v1 }
 0x403   :  { %6044 = vmatmul.mubr.f32.vlgmr.msra.gmra.mrb[6].mxu0 %v3083_v21 }
 0x404   :  { %6047 = vmatpush3.xpose.msra.mxu0 %v3095_v24  ;;  %6048 = vmatprep.mubr.msk.f32.mxu0 %vm6653_vm0, %v6654_v1 }
 0x405   :  { %6051 = vmatprep.subr.mxu0 %v6654_v1 }
 0x40a   :  { %v3474_v32 = vpop.permute.xlu1 %3473 }
 0x40b   :  { %6049 = vmatmul.mubr.f32.vlgmr.msra.gmra.mrb[6].mxu0 %v3084_v23  ;;  %v3476_v33 = vsel %vm566_vm2, %v3474_v32, 0.0 }
 0x40c   :  { %6052 = vmatpush3.xpose.msra.mxu0 %v3018_v22  ;;  %3477 = vadd.xlane.f32.xlu1 %v3476_v33 }
 0x40d   :  { %6053 = vmatprep.mubr.msk.f32.mxu0 %vm6653_vm0, %v6654_v1  ;;  %6056 = vmatprep.subr.mxu0 %v6654_v1 }
 0x40e   :  { %v3955_v34 = vpop.permute.xlu1 %3954 }
 0x40f   :  { %v3957_v35 = vsel %vm566_vm2, %v3955_v34, 0.0 }
 0x410   :  { %3958 = vadd.xlane.f32.xlu0 %v3957_v35 }
 0x413   :  { %6054 = vmatmul.mubr.f32.vlgmr.msra.gmra.mrb[6].mxu0 %v3085_v25 }
 0x414   :  { %6057 = vmatpush3.xpose.msra.mxu0 %v3096_v26  ;;  %6058 = vmatprep.mubr.msk.f32.mxu0 %vm6653_vm0, %v6654_v1 }
 0x415   :  { %6061 = vmatprep.subr.mxu0 %v6654_v1 }
 0x41b   :  { %6059 = vmatmul.mubr.f32.vlgmr.msra.gmra.mrb[6].mxu0 %v3083_v21 }
 0x41c   :  { %6062 = vmatpush3.xpose.msra.mxu0 %v3018_v22  ;;  %6063 = vmatprep.mubr.msk.f32.mxu0 %vm6653_vm0, %v6654_v1 }
 0x41d   :  { %6066 = vmatprep.subr.mxu0 %v6654_v1 }
 0x423   :  { %6064 = vmatmul.mubr.f32.vlgmr.msra.gmra.mrb[6].mxu0 %v3083_v21 }
 0x424   :  { %6067 = vmatpush3.msra.mxu0 %v7059_v36  ;;  %6068 = vmatprep.mubr.msk.f32.mxu0 %vm6653_vm0, %v6654_v1 }
 0x425   :  { %6071 = vmatprep.subr.mxu0 %v6654_v1 }
 0x499   :  { %v3478_v47 = vpop.xlane.xlu1 %3477 }
 0x49d   :  { %v2019_v37 = vpop.f32.mrb[2].mxu0  ;;  %v3959_v59 = vpop.xlane.xlu0 %3958 }
 0x49e   :  { %v5939_v38 = vpop.f32.mrb[3].mxu0  ;;  %v2024_v62 = vmul.f32 1.442695, %v2019_v37  ;;  %vm2023_vm10 = vcmp.gt.f32.partialorder %v2019_v37, 0.0 }
 0x4c9   :  { %v2519_v40 = vpop.f32.mrb[4].mxu0 }
 0x4ca   :  { %v5981_v41 = vpop.f32.mrb[5].mxu0  ;;  %v2524_v63 = vmul.f32 1.442695, %v2519_v40  ;;  %vm2523_vm11 = vcmp.gt.f32.partialorder %v2519_v40, 0.0 }
 0x4f6   :  { %v3459_v42 = vpop.f32.mrb[6].mxu0 }
 0x4f7   :  { %v3482_v43 = vrot.slane %v3459_v42, %v1542_v4  ;;  %v3963_v44 = vrot.slane %v3459_v42, %v2037_v7  ;;  %v6065_v45 = vpop.f32.mrb[7].mxu0 }
 0x4f8   :  { %v4465_v45 = vld [vmem:[%s7297_s12 + $0x10] sm:$0xff] }
 0x4f9   :  { %v3483_v48 = vadd.f32 %v3482_v43, %v3478_v47  ;;  %v3964_v49 = vadd.f32 %v3963_v44, %v3959_v59  ;;  %v4464_v44 = vld [vmem:[%s7297_s12 + $0x8] sm:$0xff]  ;;  %v4466_v59 = vld [vmem:[%s7297_s12 + $0x18] sm:$0xff] }
 0x4fa   :  { %v4477_v47 = vand.u32 4294901760, %v4464_v44 }
 0x4fb   :  { %vm3965_vm8 = vcmp.gt.f32.partialorder %v3964_v49, 0.0  ;;  %v3966_v50 = vmul.f32 0.2, %v3964_v49  ;;  %vm3484_vm9 = vcmp.gt.f32.partialorder %v3483_v48, 0.0  ;;  %v3485_v52 = vmul.f32 0.2, %v3483_v48 }
 0x4fd   :  { %v3967_v53 = vsel %vm3965_vm8, %v3964_v49, %v3966_v50  ;;  %v3486_v54 = vsel %vm3484_vm9, %v3483_v48, %v3485_v52  ;;  %v4480_v48 = vand.u32 4294901760, %v4465_v45  ;;  %v4483_v49 = vand.u32 4294901760, %v4466_v59 }
 0x4fe   :  { %v3968_v27 = vsel %vm3487_vm7, %v3967_v53, -9e+15  ;;  %v3488_v55 = vsel %vm3487_vm7, %v3486_v54, -9e+15  ;;  %v7133_v52 = vsub.f32 %v4464_v44, %v4477_v47 }
 0x4ff   :  { %v3969_v4 = vsel %vm566_vm2, %v3968_v27, -inf  ;;  %v3489_v3 = vsel %vm566_vm2, %v3488_v55, -inf  ;;  %v7135_v53 = vsub.f32 %v4465_v45, %v4480_v48  ;;  %v7137_v54 = vsub.f32 %v4466_v59, %v4483_v49 }
 0x500   :  { %3970 = vmax.xlane.f32.xlu0 %v3969_v4  ;;  %3490 = vmax.xlane.f32.xlu1 %v3489_v3 }
 0x501   :  { %v4571_v4 = vand.u32 4294901760, %v7135_v53  ;;  %v4578_v3 = vand.u32 4294901760, %v7137_v54 }
 0x58d   :  { %v3971_v7 = vpop.xlane.xlu0 %3970  ;;  %v3491_v56 = vpop.xlane.xlu1 %3490 }
 0x58e   :  { %v3972_v2 = vsub.f32 %v3968_v27, %v3971_v7  ;;  %v3492_v5 = vsub.f32 %v3488_v55, %v3491_v56  ;;  %v4564_v55 = vand.u32 4294901760, %v7133_v52 }
 0x590   :  { %v3973_v13 = vmul.f32 1.442695, %v3972_v2  ;;  %v3493_v57 = vmul.f32 1.442695, %v3492_v5  ;;  %v4565_v56 = vsub.f32 %v7133_v52, %v4564_v55  ;;  %v4572_v2 = vsub.f32 %v7135_v53, %v4571_v4 }
 0x591   :  { %v4579_v5 = vsub.f32 %v7137_v54, %v4578_v3 }
 0x592   :  { %6551 = vpow2.f32 %v3973_v13 }
 0x593   :  { %6553 = vpow2.f32 %v3493_v57  ;;  %v4566_v57 = vand.u32 4294901760, %v4565_v56 }
 0x594   :  { %6555 = vpow2.f32 %v2024_v62 }
 0x595   :  { %6557 = vpow2.f32 %v2524_v63  ;;  %v4468_v63 = vld [vmem:[%s7297_s12 + $0x28] sm:$0xff] }
 0x59c   :  { %v6552_v58 = vpop.eup %6551 }
 0x59d   :  { %v6554_v60 = vpop.eup %6553  ;;  %v3975_v61 = vsel %vm566_vm2, %v6552_v58, 0.0 }
 0x59e   :  { %3976 = vadd.xlane.f32.xlu0 %v3975_v61  ;;  %v3495_v19 = vsel %vm566_vm2, %v6554_v60, 0.0  ;;  %v6556_v8 = vpop.eup %6555 }
 0x59f   :  { %3496 = vadd.xlane.f32.xlu1 %v3495_v19  ;;  %v5565_v9 = vadd.f32 -1.0, %v6556_v8  ;;  %v6558_v10 = vpop.eup %6557  ;;  %v4467_v19 = vld [vmem:[%s7297_s12 + $0x20] sm:$0xff] }
 0x5a0   :  { %v5566_v12 = vadd.f32 -1.0, %v6558_v10  ;;  %v4486_v8 = vand.u32 4294901760, %v4467_v19 }
 0x5a1   :  { %v2027_v11 = vsel %vm2023_vm10, %v2019_v37, %v5565_v9  ;;  %v4489_v9 = vand.u32 4294901760, %v4468_v63 }
 0x5a2   :  { %v2527_v6 = vsel %vm2523_vm11, %v2519_v40, %v5566_v12  ;;  %v7163_v10 = vsub.f32 %v4467_v19, %v4486_v8 }
 0x5a4   :  { %v4585_v12 = vand.u32 4294901760, %v7163_v10 }
 0x5b0   :  { %3980 = vrot.lane.b32.xlu1 %v6986_v39, %s6655_s0 }
 0x5b4   :  { %4442 = vrot.lane.b32.xlu1 %v2027_v11, %s6656_s2  ;;  %4438 = vrot.lane.b32.xlu0 %v6872_v51, %s6659_s10  ;;  %v3581_v51 = vsub.f32 %v6986_v39, %v7059_v36  ;;  %v7165_v11 = vsub.f32 %v4468_v63, %v4489_v9 }
 0x5b6   :  { %v3582_v30 = vand.u32 4294901760, %v3581_v51 }
 0x5b8   :  { %4446 = vrot.lane.b32.xlu1 %v2527_v6, %s6660_s26  ;;  %v3583_v37 = vsub.f32 %v3581_v51, %v3582_v30  ;;  %v4592_v6 = vand.u32 4294901760, %v7165_v11 }
 0x5ba   :  { %v3584_v43 = vand.u32 4294901760, %v3583_v37  ;;  %v6391_v37 = vpack.c.bf16 %v4592_v6, %v4585_v12 }
 0x62b   :  { %v3977_v14 = vpop.xlane.xlu0 %3976 }
 0x62c   :  { %6559 = vrcp.f32 %v3977_v14  ;;  %v3497_v15 = vpop.xlane.xlu1 %3496 }
 0x62d   :  { %6561 = vrcp.f32 %v3497_v15 }
 0x630   :  { %v3981_v16 = vpop.permute.xlu1 %3980 }
 0x631   :  { %v3987_v17 = vand.u32 4294901760, %v3981_v16 }
 0x633   :  { %6097 = vmatpush3.msra.mxu1 %v3987_v17  ;;  %v4064_v22 = vsub.f32 %v3981_v16, %v3987_v17 }
 0x634   :  { %6101 = vmatprep.subr.mxu1 %v6654_v1 }
 0x635   :  { %v4065_v28 = vand.u32 4294901760, %v4064_v22 }
 0x636   :  { %v6560_v18 = vpop.eup %6559 }
 0x637   :  { %v6562_v20 = vpop.eup %6561  ;;  %v3979_v21 = vmul.f32 %v6560_v18, %v6552_v58  ;;  %v4066_v34 = vsub.f32 %v4064_v22, %v4065_v28  ;;  %v4573_v58 = vand.u32 4294901760, %v4572_v2  ;;  %v4586_v18 = vsub.f32 %v7163_v10, %v4585_v12 }
 0x638   :  { %v3499_v23 = vmul.f32 %v6562_v20, %v6554_v60  ;;  %v4580_v60 = vand.u32 4294901760, %v4579_v5  ;;  %v4593_v20 = vsub.f32 %v7165_v11, %v4592_v6 }
 0x639   :  { %v3984_v24 = vsel %vm566_vm2, %v3979_v21, 0  ;;  %v4067_v42 = vand.u32 4294901760, %v4066_v34 }
 0x63a   :  { %v3501_v25 = vsel %vm566_vm2, %v3499_v23, 0  ;;  %v4052_v26 = vand.u32 4294901760, %v3984_v24  ;;  %v6361_v62 = vpack.c.bf16 %v4580_v60, %v4573_v58  ;;  %v4594_v23 = vand.u32 4294901760, %v4593_v20  ;;  %v5570_v60 = vld [vmem:[%s7298_s13] ss:$0 sm:$0xff] }
 0x63b   :  { %v3569_v29 = vand.u32 4294901760, %v3501_v25  ;;  %vm4469_vm2 = vcmask 392192  }
 0x63c   :  { %v4053_v31 = vsub.f32 %v3984_v24, %v4052_v26 }
 0x63d   :  { %v3570_v32 = vsub.f32 %v3501_v25, %v3569_v29 }
 0x63e   :  { %v4054_v33 = vand.u32 4294901760, %v4053_v31 }
 0x63f   :  { %v3571_v35 = vand.u32 4294901760, %v3570_v32 }
 0x640   :  { %v4055_v38 = vsub.f32 %v4053_v31, %v4054_v33 }
 0x641   :  { %v3572_v40 = vsub.f32 %v3570_v32, %v3571_v35 }
 0x642   :  { %v4056_v41 = vand.u32 4294901760, %v4055_v38  ;;  %v5572_v38 = vld [vmem:[%s7299_s14] ss:$0 sm:$0xff] }
 0x643   :  { %v3573_v39 = vand.u32 4294901760, %v3572_v40  ;;  %v4443_v40 = vpop.permute.xlu1 %4442 }
 0x644   :  { %6099 = vmatmul.mubr.f32.vlgmr.msra.gmra.mrb[8].mxu1 %v4056_v41 }
 0x645   :  { %6069 = vmatmul.mubr.f32.vlgmr.msra.gmra.mrb[8].mxu0 %v3573_v39  ;;  %6102 = vmatpush3.msra.mxu1 %v4067_v42  ;;  %v4439_v42 = vpop.permute.xlu0 %4438 }
 0x646   :  { %6072 = vmatpush3.msra.mxu0 %v3584_v43  ;;  %6073 = vmatprep.mubr.msk.f32.mxu0 %vm6653_vm0, %v6654_v1  ;;  %v4457_v39 = vsel %vm97_vm1, %v4439_v42, %v4443_v40 }
 0x647   :  { %6076 = vmatprep.subr.mxu0 %v6654_v1  ;;  %6103 = vmatprep.mubr.msk.f32.mxu1 %vm6653_vm0, %v6654_v1  ;;  %v4447_v41 = vpop.permute.xlu1 %4446 }
 0x648   :  { %6106 = vmatprep.subr.mxu1 %v6654_v1 }
 0x64c   :  { %6104 = vmatmul.mubr.f32.vlgmr.msra.gmra.mrb[8].mxu1 %v4052_v26 }
 0x64d   :  { %6074 = vmatmul.mubr.f32.vlgmr.msra.gmra.mrb[8].mxu0 %v3569_v29  ;;  %6107 = vmatpush3.msra.mxu1 %v4064_v22 }
 0x64e   :  { %6077 = vmatpush3.msra.mxu0 %v3581_v51  ;;  %6078 = vmatprep.mubr.msk.f32.mxu0 %vm6653_vm0, %v6654_v1  ;;  %v4587_v51 = vand.u32 4294901760, %v4586_v18 }
 0x64f   :  { %6081 = vmatprep.subr.mxu0 %v6654_v1  ;;  %6108 = vmatprep.mubr.msk.f32.mxu1 %vm6653_vm0, %v6654_v1 }
 0x650   :  { %6111 = vmatprep.subr.mxu1 %v6654_v1  ;;  %v6364_v24 = vpack.c.bf16 %v4594_v23, %v4587_v51 }
 0x654   :  { %6109 = vmatmul.mubr.f32.vlgmr.msra.gmra.mrb[8].mxu1 %v4053_v31  ;;  %v7180_v31 = vpack.c.bf16 %v4489_v9, %v4486_v8 }
 0x655   :  { %6079 = vmatmul.mubr.f32.vlgmr.msra.gmra.mrb[8].mxu0 %v3570_v32  ;;  %6112 = vmatpush3.msra.mxu1 %v3987_v17 }
 0x656   :  { %6082 = vmatpush3.msra.mxu0 %v7059_v36  ;;  %6083 = vmatprep.mubr.msk.f32.mxu0 %vm6653_vm0, %v6654_v1 }
 0x657   :  { %6086 = vmatprep.subr.mxu0 %v6654_v1  ;;  %6113 = vmatprep.mubr.msk.f32.mxu1 %vm6653_vm0, %v6654_v1 }
 0x658   :  { %6116 = vmatprep.subr.mxu1 %v6654_v1 }
 0x65c   :  { %6114 = vmatmul.mubr.f32.vlgmr.msra.gmra.mrb[8].mxu1 %v4054_v33 }
 0x65d   :  { %6084 = vmatmul.mubr.f32.vlgmr.msra.gmra.mrb[8].mxu0 %v3571_v35  ;;  %6117 = vmatpush3.msra.mxu1 %v4065_v28  ;;  %v6373_v35 = vpack.c.bf16 %v7165_v11, %v7163_v10 }
 0x65e   :  { %6087 = vmatpush3.msra.mxu0 %v3582_v30  ;;  %6088 = vmatprep.mubr.msk.f32.mxu0 %vm6653_vm0, %v6654_v1 }
 0x65f   :  { %6091 = vmatprep.subr.mxu0 %v6654_v1  ;;  %6118 = vmatprep.mubr.msk.f32.mxu1 %vm6653_vm0, %v6654_v1 }
 0x660   :  { %6121 = vmatprep.subr.mxu1 %v6654_v1 }
 0x664   :  { %6119 = vmatmul.mubr.f32.vlgmr.msra.gmra.mrb[8].mxu1 %v4052_v26 }
 0x665   :  { %6089 = vmatmul.mubr.f32.vlgmr.msra.gmra.mrb[8].mxu0 %v3569_v29  ;;  %6122 = vmatpush3.msra.mxu1 %v3987_v17 }
 0x666   :  { %6092 = vmatpush3.msra.mxu0 %v7059_v36  ;;  %6093 = vmatprep.mubr.msk.f32.mxu0 %vm6653_vm0, %v6654_v1  ;;  %v4463_v36 = vld [vmem:[%s7297_s12] sm:$0xff]  ;;  %s6661_s12 = smov 40  }
 0x667   :  { %6123 = vmatprep.mubr.msk.f32.mxu1 %vm6653_vm0, %v6654_v1  ;;  %6357 = vmatprep.subr.bf16.mxu0 %v6652_v0  ;;  %v4474_v46 = vand.u32 4294901760, %v4463_v36 }
 0x668   :  { %6348 = vmatprep.subr.bf16.mxu1 %v6652_v0 }
 0x669   :  { %v7131_v50 = vsub.f32 %v4463_v36, %v4474_v46  ;;  %v7171_v25 = vpack.c.bf16 %v4477_v47, %v4474_v46  ;;  %v4458_v36 = vsel %vm2535_vm3, %v4457_v39, %v4447_v41 }
 0x66b   :  { %v4557_v27 = vand.u32 4294901760, %v7131_v50  ;;  %v6367_v59 = vpack.c.bf16 %v7133_v52, %v7131_v50 }
 0x66c   :  { %6124 = vmatmul.mubr.f32.vlgmr.msra.gmra.mrb[8].mxu1 %v4052_v26  ;;  %v7176_v26 = vpack.c.bf16 %v4483_v49, %v4480_v48 }
 0x66d   :  { %6094 = vmatmul.mubr.f32.vlgmr.msra.gmra.mrb[8].mxu0 %v3569_v29  ;;  %6138 = vmatprep.mubr.msk.f32.mxu1 %vm6653_vm0, %v6654_v1  ;;  %v4558_v7 = vsub.f32 %v7131_v50, %v4557_v27 }
 0x66e   :  { %6153 = vmatprep.mubr.msk.f32.mxu0 %vm6653_vm0, %v6654_v1  ;;  %6350 = vmatpush3.bf16.msra.mxu1 %v7171_v25 }
 0x66f   :  { %v4559_v13 = vand.u32 4294901760, %v4558_v7  ;;  %6351 = vmatprep.subr.bf16.mxu1 %v6652_v0  ;;  %v6370_v7 = vpack.c.bf16 %v7137_v54, %v7135_v53 }
 0x671   :  { %v6358_v61 = vpack.c.bf16 %v4566_v57, %v4559_v13  ;;  %v6385_v13 = vpack.c.bf16 %v4564_v55, %v4557_v27  ;;  %v6388_v57 = vpack.c.bf16 %v4578_v3, %v4571_v4 }
 0x672   :  { %6353 = vmatpush3.bf16.msra.mxu1 %v7176_v26 }
 0x673   :  { %6359 = vmatpush3.bf16.msra.mxu0 %v6358_v61  ;;  %6354 = vmatprep.subr.bf16.mxu1 %v6652_v0 }
 0x674   :  { %6360 = vmatprep.subr.bf16.mxu0 %v6652_v0 }
 0x676   :  { %6356 = vmatpush3.bf16.msra.mxu1 %v7180_v31 }
 0x677   :  { %6362 = vmatpush3.bf16.msra.mxu0 %v6361_v62  ;;  %6402 = vmatprep.subr.bf16.mxu1 %v6652_v0  ;;  %v5571_v62 = vld [vmem:[%s7300_s15] ss:$0 sm:$0xff] }
 0x678   :  { %6363 = vmatprep.subr.bf16.mxu0 %v6652_v0 }
 0x67b   :  { %6365 = vmatpush3.bf16.msra.mxu0 %v6364_v24 }
 0x67c   :  { %6366 = vmatprep.subr.bf16.mxu0 %v6652_v0 }
 0x73f   :  { %v4428_v14 = vpop.f32.mrb[8].mxu1 }
 0x740   :  { %v3945_v15 = vpop.f32.mrb[8].mxu0  ;;  %v4433_v16 = vmul.f32 1.442695, %v4428_v14  ;;  %v6125_v17 = vpop.f32.mrb[9].mxu1  ;;  %vm4432_vm12 = vcmp.gt.f32.partialorder %v4428_v14, 0.0 }
 0x741   :  { %v3950_v21 = vmul.f32 1.442695, %v3945_v15  ;;  %v6095_v22 = vpop.f32.mrb[9].mxu0  ;;  %vm3949_vm13 = vcmp.gt.f32.partialorder %v3945_v15, 0.0 }
 0x742   :  { %6563 = vpow2.f32 %v4433_v16 }
 0x743   :  { %6565 = vpow2.f32 %v3950_v21 }
 0x74c   :  { %v6564_v28 = vpop.eup %6563 }
 0x74d   :  { %v6566_v29 = vpop.eup %6565  ;;  %v5569_v30 = vadd.f32 -1.0, %v6564_v28 }
 0x74e   :  { %v5568_v32 = vadd.f32 -1.0, %v6566_v29 }
 0x74f   :  { %v4436_v33 = vsel %vm4432_vm12, %v4428_v14, %v5569_v30 }
 0x750   :  { %v3953_v34 = vsel %vm3949_vm13, %v3945_v15, %v5568_v32  ;;  %4454 = vrot.lane.b32.xlu1 %v4436_v33, %s6661_s12 }
 0x751   :  { %4450 = vrot.lane.b32.xlu0 %v3953_v34, %s6662_s6 }
 0x754   :  { %5030 = vrot.lane.b32.xlu1 %v5572_v38, %s6662_s6 }
 0x755   :  { %5015 = vrot.lane.b32.xlu0 %v5572_v38, %s6656_s2 }
 0x7c2   :  { %v4455_v43 = vpop.permute.xlu1 %4454 }
 0x7c3   :  { %v4451_v44 = vpop.permute.xlu0 %4450 }
 0x7c4   :  { %v4460_v45 = vsel %vm4459_vm14, %v4458_v36, %v4451_v44 }
 0x7c5   :  { %v4462_v46 = vsel %vm4461_vm15, %v4460_v45, %v4455_v43 }
 0x7c6   :  { %v4471_v47 = vsel %vm4469_vm2, %v4462_v46, 0  ;;  %v5031_v27 = vpop.permute.xlu1 %5030 }
 0x7c7   :  { %v4544_v48 = vand.u32 4294901760, %v4471_v47  ;;  %v5016_v53 = vpop.permute.xlu0 %5015 }
 0x7c9   :  { %v4545_v49 = vsub.f32 %v4471_v47, %v4544_v48  ;;  %6154 = vmatmul.mubr.f32.vlgmr.msra.gmra.mrb[10].mxu0 %v4544_v48 }
 0x7ca   :  { %6368 = vmatpush3.bf16.msra.mxu0 %v6367_v59  ;;  %6168 = vmatprep.mubr.msk.f32.mxu0 %vm6653_vm0, %v6654_v1 }
 0x7cb   :  { %v4546_v56 = vand.u32 4294901760, %v4545_v49  ;;  %6369 = vmatprep.subr.bf16.mxu0 %v6652_v0 }
 0x7cd   :  { %v4547_v2 = vsub.f32 %v4545_v49, %v4546_v56 }
 0x7ce   :  { %6371 = vmatpush3.bf16.msra.mxu0 %v6370_v7 }
 0x7cf   :  { %6372 = vmatprep.subr.bf16.mxu0 %v6652_v0  ;;  %v4548_v5 = vand.u32 4294901760, %v4547_v2 }
 0x7d1   :  { %6139 = vmatmul.mubr.f32.vlgmr.msra.gmra.mrb[10].mxu1 %v4548_v5 }
 0x7d2   :  { %6374 = vmatpush3.bf16.msra.mxu0 %v6373_v35  ;;  %6220 = vmatprep.mubr.msk.f32.mxu1 %vm6653_vm0, %v6654_v1  ;;  %v5073_v35 = vld [vmem:[%s7301_s16] sm:$0xff] }
 0x7d3   :  { %6375 = vmatprep.subr.bf16.mxu0 %v6652_v0  ;;  %v5086_v40 = vand.u32 4294901760, %v5073_v35 }
 0x7d5   :  { %6169 = vmatmul.mubr.f32.vlgmr.msra.gmra.mrb[10].mxu0 %v4545_v49  ;;  %v5164_v45 = vsub.f32 %v5073_v35, %v5086_v40 }
 0x7d6   :  { %6377 = vmatpush3.bf16.msra.mxu0 %v7171_v25  ;;  %6183 = vmatprep.mubr.msk.f32.mxu0 %vm6653_vm0, %v6654_v1 }
 0x7d7   :  { %6378 = vmatprep.subr.bf16.mxu0 %v6652_v0  ;;  %v5165_v59 = vand.u32 4294901760, %v5164_v45 }
 0x7d9   :  { %v5166_v49 = vsub.f32 %v5164_v45, %v5165_v59 }
 0x7da   :  { %6380 = vmatpush3.bf16.msra.mxu0 %v7176_v26 }
 0x7db   :  { %6381 = vmatprep.subr.bf16.mxu0 %v6652_v0 }
 0x7de   :  { %6383 = vmatpush3.bf16.msra.mxu0 %v7180_v31 }
 0x7df   :  { %6384 = vmatprep.subr.bf16.mxu0 %v6652_v0 }
 0x7e1   :  { %6184 = vmatmul.mubr.f32.vlgmr.msra.gmra.mrb[10].mxu0 %v4546_v56  ;;  %v5167_v56 = vand.u32 4294901760, %v5166_v49 }
 0x7e2   :  { %6386 = vmatpush3.bf16.msra.mxu0 %v6385_v13  ;;  %6198 = vmatprep.mubr.msk.f32.mxu0 %vm6653_vm0, %v6654_v1 }
 0x7e3   :  { %6387 = vmatprep.subr.bf16.mxu0 %v6652_v0 }
 0x7e6   :  { %6389 = vmatpush3.bf16.msra.mxu0 %v6388_v57 }
 0x7e7   :  { %6390 = vmatprep.subr.bf16.mxu0 %v6652_v0 }
 0x7ea   :  { %6392 = vmatpush3.bf16.msra.mxu0 %v6391_v37  ;;  %v5074_v37 = vld [vmem:[%s7301_s16 + $0x8] sm:$0xff] }
 0x7eb   :  { %6393 = vmatprep.subr.bf16.mxu0 %v6652_v0  ;;  %v5089_v41 = vand.u32 4294901760, %v5074_v37 }
 0x7ed   :  { %6199 = vmatmul.mubr.f32.vlgmr.msra.gmra.mrb[10].mxu0 %v4544_v48  ;;  %v6403_v44 = vpack.c.bf16 %v5089_v41, %v5086_v40  ;;  %v5171_v46 = vsub.f32 %v5074_v37, %v5089_v41 }
 0x7ee   :  { %6395 = vmatpush3.bf16.msra.mxu0 %v7171_v25  ;;  %6213 = vmatprep.mubr.msk.f32.mxu0 %vm6653_vm0, %v6654_v1 }
 0x7ef   :  { %6396 = vmatprep.subr.bf16.mxu0 %v6652_v0  ;;  %6404 = vmatpush3.bf16.msra.mxu1 %v6403_v44  ;;  %v6409_v13 = vpack.c.bf16 %v5171_v46, %v5164_v45 }
 0x7f0   :  { %6405 = vmatprep.subr.bf16.mxu1 %v6652_v0 }
 0x7f2   :  { %6398 = vmatpush3.bf16.msra.mxu0 %v7176_v26 }
 0x7f3   :  { %6399 = vmatprep.subr.bf16.mxu0 %v6652_v0 }
 0x7f6   :  { %6401 = vmatpush3.bf16.msra.mxu0 %v7180_v31 }
 0x7f9   :  { %6214 = vmatmul.mubr.f32.vlgmr.msra.gmra.mrb[10].mxu0 %v4544_v48  ;;  %v5172_v48 = vand.u32 4294901760, %v5171_v46 }
 0x7fb   :  { %v5173_v7 = vsub.f32 %v5171_v46, %v5172_v48  ;;  %v6415_v57 = vpack.c.bf16 %v5172_v48, %v5165_v59 }
 0x7fd   :  { %v5174_v2 = vand.u32 4294901760, %v5173_v7 }
 0x7ff   :  { %v6406_v5 = vpack.c.bf16 %v5174_v2, %v5167_v56 }
 0x8a4   :  { %v4550_v50 = vpop.f32.mrb[10].mxu1 }
 0x8a5   :  { %v6140_v52 = vpop.f32.mrb[11].mxu1 }
 0x8cc   :  { %v4980_v54 = vpop.f32.mrb[10].mxu0 }
 0x8cd   :  { %v7231_v55 = vadd.f32 %v4980_v54, %v4550_v50  ;;  %v6215_v4 = vpop.f32.mrb[11].mxu0 }
 0x8cf   :  { %v5018_v3 = vmul.f32 %v7231_v55, %v5016_v53  ;;  %v5033_v58 = vmul.f32 %v7231_v55, %v5031_v27  ;;  %v4993_v61 = vmul.f32 %v7231_v55, %v5570_v60  ;;  %v5003_v63 = vmul.f32 %v7231_v55, %v5571_v62 }
 0x8d1   :  { %5035 = vrot.lane.b32.xlu1 %v5033_v58, %s6659_s10  ;;  %5020 = vrot.lane.b32.xlu0 %v5018_v3, %s6657_s23  ;;  %v4994_v19 = vsel %vm97_vm1, %v4993_v61, 0.0  ;;  %v5004_v8 = vsel %vm97_vm1, %v5003_v63, 0.0 }
 0x8f0   :  { %4995 = vadd.xlane.f32.xlu0 %v4994_v19 }
 0x8f4   :  { %5005 = vadd.xlane.f32.xlu0 %v5004_v8 }
 0x943   :  { %v5036_v9 = vpop.permute.xlu1 %5035  ;;  %v5021_v10 = vpop.permute.xlu0 %5020 }
 0x944   :  { %v5023_v11 = vsel %vm97_vm1, %v5021_v10, 0.0  ;;  %v5038_v12 = vsel %vm97_vm1, %v5036_v9, 0.0 }
 0x945   :  { %5024 = vadd.xlane.f32.xlu1 %v5023_v11  ;;  %5039 = vadd.xlane.f32.xlu0 %v5038_v12 }
 0x97d   :  { %v4996_v6 = vpop.xlane.xlu0 %4995 }
 0x981   :  { %v5006_v14 = vpop.xlane.xlu0 %5005 }
 0x982   :  { %v5008_v17 = vmul.f32 0.2, %v5006_v14  ;;  %vm5007_vm3 = vcmp.gt.f32.partialorder %v5006_v14, 0.0 }
 0x984   :  { %v5009_v51 = vsel %vm5007_vm3, %v5006_v14, %v5008_v17 }
 0x9d2   :  { %v5025_v15 = vpop.xlane.xlu1 %5024  ;;  %v5040_v16 = vpop.xlane.xlu0 %5039 }
 0x9d3   :  { %v5026_v18 = vadd.f32 %v5025_v15, %v4996_v6  ;;  %v5041_v20 = vadd.f32 %v5040_v16, %v4996_v6 }
 0x9d5   :  { %vm5027_vm4 = vcmp.gt.f32.partialorder %v5026_v18, 0.0  ;;  %v5028_v21 = vmul.f32 0.2, %v5026_v18  ;;  %v5043_v22 = vmul.f32 0.2, %v5041_v20  ;;  %vm5042_vm5 = vcmp.gt.f32.partialorder %v5041_v20, 0.0 }
 0x9d7   :  { %v5029_v23 = vsel %vm5027_vm4, %v5026_v18, %v5028_v21  ;;  %v5044_v25 = vsel %vm5042_vm5, %v5041_v20, %v5043_v22 }
 0x9d8   :  { %v5045_v24 = vmax.f32 %v5009_v51, %v5029_v23 }
 0x9da   :  { %v5046_v26 = vmax.f32 %v5045_v24, %v5044_v25 }
 0x9dc   :  { %v5047_v28 = vsub.f32 %v5009_v51, %v5046_v26  ;;  %v5050_v29 = vsub.f32 %v5029_v23, %v5046_v26  ;;  %v5053_v30 = vsub.f32 %v5044_v25, %v5046_v26 }
 0x9de   :  { %v5048_v31 = vmul.f32 1.442695, %v5047_v28  ;;  %v5051_v32 = vmul.f32 1.442695, %v5050_v29  ;;  %v5054_v33 = vmul.f32 1.442695, %v5053_v30 }
 0x9e0   :  { %6567 = vpow2.f32 %v5048_v31 }
 0x9e1   :  { %6569 = vpow2.f32 %v5051_v32 }
 0x9e2   :  { %6571 = vpow2.f32 %v5054_v33 }
 0x9ea   :  { %v6568_v34 = vpop.eup %6567 }
 0x9eb   :  { %v6570_v38 = vpop.eup %6569  ;;  %v5056_v50 = vmul.f32 %v6568_v34, %v7231_v55 }
 0x9ec   :  { %v6572_v42 = vpop.eup %6571  ;;  %v5057_v39 = vmul.f32 %v6570_v38, %v7231_v55  ;;  %v5069_v43 = vadd.f32 %v6570_v38, %v6568_v34 }
 0x9ed   :  { %v5063_v36 = vmul.f32 %v6572_v42, %v7231_v55  ;;  %v5573_v55 = vld [vmem:[%s7302_s17] ss:$0 sm:$0xff] }
 0x9ee   :  { %5059 = vrot.lane.b32.xlu1 %v5057_v39, %s6657_s23  ;;  %v5070_v47 = vadd.f32 %v6572_v42, %v5069_v43 }
 0x9ef   :  { %5065 = vrot.lane.b32.xlu0 %v5063_v36, %s6659_s10 }
 0x9f0   :  { %6573 = vrcp.f32 %v5070_v47 }
 0x9fa   :  { %v6574_v4 = vpop.eup %6573 }
 0xa60   :  { %v5060_v52 = vpop.permute.xlu1 %5059 }
 0xa61   :  { %v5062_v53 = vadd.f32 %v5060_v52, %v5056_v50  ;;  %v5066_v54 = vpop.permute.xlu0 %5065 }
 0xa63   :  { %v5068_v27 = vadd.f32 %v5066_v54, %v5062_v53 }
 0xa65   :  { %v5072_v3 = vmul.f32 %v6574_v4, %v5068_v27 }
 0xa67   :  { %v5083_v58 = vsel %vm97_vm1, %v5072_v3, 0  ;;  %vm5544_vm1 = vcmask 31744  }
 0xa68   :  { %v5152_v60 = vand.u32 4294901760, %v5083_v58 }
 0xa6a   :  { %v5153_v61 = vsub.f32 %v5083_v58, %v5152_v60 }
 0xa6c   :  { %v5154_v62 = vand.u32 4294901760, %v5153_v61 }
 0xa6e   :  { %v5155_v19 = vsub.f32 %v5153_v61, %v5154_v62 }
 0xa70   :  { %v5156_v63 = vand.u32 4294901760, %v5155_v19 }
 0xa72   :  { %6221 = vmatmul.mubr.f32.vlgmr.msra.gmra.mrb[12].mxu1 %v5156_v63 }
 0xa73   :  { %6407 = vmatpush3.bf16.msra.mxu1 %v6406_v5  ;;  %6227 = vmatprep.mubr.msk.f32.mxu1 %vm6653_vm0, %v6654_v1 }
 0xa74   :  { %6408 = vmatprep.subr.bf16.mxu1 %v6652_v0 }
 0xa7a   :  { %6228 = vmatmul.mubr.f32.vlgmr.msra.gmra.mrb[12].mxu1 %v5152_v60 }
 0xa7b   :  { %6410 = vmatpush3.bf16.msra.mxu1 %v6409_v13  ;;  %6234 = vmatprep.mubr.msk.f32.mxu1 %vm6653_vm0, %v6654_v1 }
 0xa7c   :  { %6411 = vmatprep.subr.bf16.mxu1 %v6652_v0 }
 0xa82   :  { %6235 = vmatmul.mubr.f32.vlgmr.msra.gmra.mrb[12].mxu1 %v5153_v61 }
 0xa83   :  { %6413 = vmatpush3.bf16.msra.mxu1 %v6403_v44  ;;  %6241 = vmatprep.mubr.msk.f32.mxu1 %vm6653_vm0, %v6654_v1 }
 0xa84   :  { %6414 = vmatprep.subr.bf16.mxu1 %v6652_v0 }
 0xa8a   :  { %6242 = vmatmul.mubr.f32.vlgmr.msra.gmra.mrb[12].mxu1 %v5154_v62 }
 0xa8b   :  { %6416 = vmatpush3.bf16.msra.mxu1 %v6415_v57  ;;  %6248 = vmatprep.mubr.msk.f32.mxu1 %vm6653_vm0, %v6654_v1 }
 0xa8c   :  { %6417 = vmatprep.subr.bf16.mxu1 %v6652_v0 }
 0xa92   :  { %6249 = vmatmul.mubr.f32.vlgmr.msra.gmra.mrb[12].mxu1 %v5152_v60 }
 0xa93   :  { %6419 = vmatpush3.bf16.msra.mxu1 %v6403_v44  ;;  %6255 = vmatprep.mubr.msk.f32.mxu1 %vm6653_vm0, %v6654_v1 }
 0xa9a   :  { %6256 = vmatmul.mubr.f32.vlgmr.msra.gmra.mrb[12].mxu1 %v5152_v60 }
 0xb6d   :  { %v5540_v8 = vpop.f32.mrb[12].mxu1 }
 0xb6e   :  { %v6422_v9 = vadd.f32 %v5573_v55, %v5540_v8  ;;  %v6257_v10 = vpop.f32.mrb[13].mxu1 }
 0xb70   :  { %v5545_v11 = vsel %vm5544_vm1, %v6422_v9, -inf }
 0xb71   :  { %5546 = vmax.xlane.f32.xlu1 %v5545_v11 }
 0xbfe   :  { %v5547_v12 = vpop.xlane.xlu1 %5546 }
 0xbff   :  { %v5548_v6 = vsub.f32 %v6422_v9, %v5547_v12 }
 0xc01   :  { %v5549_v0 = vmul.f32 1.442695, %v5548_v6 }
 0xc03   :  { %6575 = vpow2.f32 %v5549_v0 }
 0xc0d   :  { %v6576_v14 = vpop.eup %6575 }
 0xc0e   :  { %v5551_v15 = vsel %vm5544_vm1, %v6576_v14, 0.0 }
 0xc0f   :  { %5552 = vadd.xlane.f32.xlu0 %v5551_v15 }
 0xc9c   :  { %v5553_v1 = vpop.xlane.xlu0 %5552 }
 0xc9d   :  { %6577 = vlog2.f32 %v5553_v1 }
 0xca7   :  { %v6578_v16 = vpop.eup %6577 }
 0xca8   :  { %v5555_v17 = vmul.f32 0.6931472, %v6578_v16 }
 0xcaa   :  { %v5556_v18 = vsub.f32 %v5548_v6, %v5555_v17 }
 0xcac   :  { %5557 = vst.msk [vmem:[%s7303_s18] sm:$0xff] %vm5544_vm1, %v5556_v18 }
 0xcad   :  { %5562 = vsyncpa [#allocation3], 1 }
 0xcae   :  { %5563 = vsyncpa [#allocation5], 1 }

</bundles_post_ra>
